<compile_context>
chip_gen: v7x
topology: tpu7x:2x2x1
jax: 0.10.0
libtpu: 0.0.40
codegen_flags: <defaults>
</compile_context>

<pallas_src>
import functools
import math

import jax
import jax.numpy as jnp
from jax import lax
from jax.experimental import pallas as pl
from jax.experimental.pallas import tpu as pltpu

_LN_EPS = 1e-5                      # PyTorch nn.LayerNorm default
_GELU_C = math.sqrt(2.0 / math.pi)  # tanh-GELU constant from the module
_MiB = 1024 * 1024


def _layer_norm_f32(x, gamma, beta):
    mu = jnp.mean(x, axis=-1, keepdims=True)
    var = jnp.mean(jnp.square(x - mu), axis=-1, keepdims=True)
    return (x - mu) * lax.rsqrt(var + _LN_EPS) * gamma + beta


def _gelu_tanh(x):
    # Exactly the module's GELU: 0.5*x*(1 + tanh(sqrt(2/pi)*(x + 0.044715*x^3)))
    return 0.5 * x * (1.0 + jnp.tanh(_GELU_C * (x + 0.044715 * x * x * x)))


def _vmem_limit_bytes(est_bytes):
    """Generation-aware VMEM limit with headroom for compiler scratch."""
    cap = 64 * _MiB                      # conservative default (v7x per-TC)
    try:
        info = pltpu.get_tpu_info()
        cap = int(getattr(info, "vmem_capacity_bytes", cap)) or cap
    except Exception:
        pass
    return int(min(int(0.85 * cap), max(32 * _MiB, 2 * est_bytes)))


# ---------------------------------------------------------------------------
# Fused kernel: one grid step = one (batch element, layer) pair.
#   Residual(PreNormDrop(SelfAttention)) ; Residual(PreNorm(FeedForward))
# Activation (N, C) f32 is carried across the depth axis in VMEM scratch.
# ---------------------------------------------------------------------------
def _fused_layer_kernel(x_ref, ln1g_ref, ln1b_ref, wq_ref, wk_ref, wv_ref,
                        wproj_ref, bproj_ref, ln2g_ref, ln2b_ref,
                        w1_ref, b1_ref, w2_ref, b2_ref,
                        o_ref, act_ref, *, heads, scale):
    d = pl.program_id(1)

    @pl.when(d == 0)
    def _():
        act_ref[...] = x_ref[0].astype(jnp.float32)

    x = act_ref[...]                                            # (N, C) f32
    n_rows, C = x.shape

    # -------- Residual(PreNormDrop(SelfAttention)) --------
    xn = _layer_norm_f32(x, ln1g_ref[0].astype(jnp.float32),
                         ln1b_ref[0].astype(jnp.float32))
    xn_b = xn.astype(jnp.bfloat16)                              # bf16 MXU input

    attn_out = jnp.zeros((n_rows, C), jnp.float32)
    for h in range(heads):          # static unroll; leading-axis weight indexing
        q = jnp.dot(xn_b, wq_ref[0, h], preferred_element_type=jnp.float32)
        k = jnp.dot(xn_b, wk_ref[0, h], preferred_element_type=jnp.float32)
        v = jnp.dot(xn_b, wv_ref[0, h], preferred_element_type=jnp.float32)
        # scores = q @ k^T (contraction over head_dim, no explicit transpose)
        s = lax.dot_general(q, k, (((1,), (1,)), ((), ())),
                            preferred_element_type=jnp.float32) * scale
        s = s - jnp.max(s, axis=-1, keepdims=True)
        p = jnp.exp(s)
        p = p * pl.reciprocal(jnp.sum(p, axis=-1, keepdims=True), approx=True)
        ho = jnp.dot(p, v, preferred_element_type=jnp.float32)  # (N, hd)
        # per-head projection-accumulate (replaces concat + single proj matmul)
        attn_out = attn_out + jnp.dot(ho.astype(jnp.bfloat16), wproj_ref[0, h],
                                      preferred_element_type=jnp.float32)
    attn_out = attn_out + bproj_ref[0].astype(jnp.float32)
    x = x + attn_out                                            # residual add

    # -------- Residual(PreNorm(FeedForward)) --------
    xn2 = _layer_norm_f32(x, ln2g_ref[0].astype(jnp.float32),
                          ln2b_ref[0].astype(jnp.float32))
    hid = jnp.dot(xn2.astype(jnp.bfloat16), w1_ref[0],
                  preferred_element_type=jnp.float32)
    hid = hid + b1_ref[0].astype(jnp.float32)
    hid = _gelu_tanh(hid)
    y = jnp.dot(hid.astype(jnp.bfloat16), w2_ref[0],
                preferred_element_type=jnp.float32)
    y = y + b2_ref[0].astype(jnp.float32)
    x = x + y                                                   # residual add

    act_ref[...] = x
    o_ref[0] = x.astype(o_ref.dtype)


def transformer_forward(x, sp, *, heads):
    """Fused forward pass. `sp` = stacked per-layer params (see stack_params)."""
    B, N, C = x.shape
    depth = sp["wq"].shape[0]
    hd = C // heads
    mlp = sp["w1"].shape[2]
    scale = hd ** -0.5

    # --- advisory cost estimate ---
    flops = int(B * depth * (8 * N * C * C + 4 * N * N * C + 4 * N * C * mlp))
    transcendentals = int(B * depth * (heads * N * N + N * mlp + 2 * N))
    bytes_accessed = int(8 * B * N * C                       # x in + out (f32)
                         + B * depth * 2 * (4 * C * C + 2 * C * mlp)  # bf16 weights
                         + depth * 4 * (6 * C + mlp))        # f32 LN params/biases

    # --- VMEM estimate (includes the 2x double-buffer factor) ---
    weight_blk = 2 * (3 * heads * C * max(hd, 128)  # q/k/v blocks (lane-padded)
                      + heads * hd * C              # proj block
                      + 2 * C * mlp)                # ffn weight blocks
    act_blk = 4 * N * C                             # x / out blocks (f32)
    vmem_est = 2 * (weight_blk + 2 * act_blk) + 4 * N * C + 8 * N * mlp

    kernel = functools.partial(_fused_layer_kernel, heads=heads, scale=scale)

    return pl.pallas_call(
        kernel,
        out_shape=jax.ShapeDtypeStruct((B, N, C), x.dtype),
        grid_spec=pltpu.PrefetchScalarGridSpec(
            num_scalar_prefetch=0,
            grid=(B, depth),  # batch outer (parallel), depth inner (sequential)
            in_specs=[
                pl.BlockSpec((1, N, C), lambda b, d: (b, 0, 0)),           # x
                pl.BlockSpec((1, 1, C), lambda b, d: (d, 0, 0)),           # ln1 gamma
                pl.BlockSpec((1, 1, C), lambda b, d: (d, 0, 0)),           # ln1 beta
                pl.BlockSpec((1, heads, C, hd), lambda b, d: (d, 0, 0, 0)),  # Wq
                pl.BlockSpec((1, heads, C, hd), lambda b, d: (d, 0, 0, 0)),  # Wk
                pl.BlockSpec((1, heads, C, hd), lambda b, d: (d, 0, 0, 0)),  # Wv
                pl.BlockSpec((1, heads, hd, C), lambda b, d: (d, 0, 0, 0)),  # Wproj
                pl.BlockSpec((1, 1, C), lambda b, d: (d, 0, 0)),           # b_proj
                pl.BlockSpec((1, 1, C), lambda b, d: (d, 0, 0)),           # ln2 gamma
                pl.BlockSpec((1, 1, C), lambda b, d: (d, 0, 0)),           # ln2 beta
                pl.BlockSpec((1, C, mlp), lambda b, d: (d, 0, 0)),         # W1
                pl.BlockSpec((1, 1, mlp), lambda b, d: (d, 0, 0)),         # b1
                pl.BlockSpec((1, mlp, C), lambda b, d: (d, 0, 0)),         # W2
                pl.BlockSpec((1, 1, C), lambda b, d: (d, 0, 0)),           # b2
            ],
            out_specs=pl.BlockSpec((1, N, C), lambda b, d: (b, 0, 0)),
            scratch_shapes=[pltpu.VMEM((N, C), jnp.float32)],   # activation carry
        ),
        compiler_params=pltpu.CompilerParams(
            dimension_semantics=("parallel", "arbitrary"),
            vmem_limit_bytes=_vmem_limit_bytes(vmem_est),
        ),
        cost_estimate=pl.CostEstimate(flops=flops,
                                      transcendentals=transcendentals,
                                      bytes_accessed=bytes_accessed),
    )(x, sp["ln1_g"], sp["ln1_b"], sp["wq"], sp["wk"], sp["wv"],
      sp["wproj"], sp["b_proj"], sp["ln2_g"], sp["ln2_b"],
      sp["w1"], sp["b1"], sp["w2"], sp["b2"])


# ---------------------------------------------------------------------------
# Host-side parameter preparation: stack layers on a leading depth axis,
# pre-split qkv / proj weights per head, cast matmul weights to bf16.
# ---------------------------------------------------------------------------
def stack_params(params, heads):
    depth = len(params)
    C = params[0]["w_qkv"].shape[0]
    mlp = params[0]["w1"].shape[1]
    hd = C // heads
    bf = jnp.bfloat16

    def stk(name):
        return jnp.stack([p[name] for p in params])

    w_qkv = stk("w_qkv")                                   # (depth, C, 3C)

    def split_heads(w):                                    # (depth, C, C) -> (depth, H, C, hd)
        return w.reshape(depth, C, heads, hd).transpose(0, 2, 1, 3)

    return dict(
        ln1_g=stk("ln1_g").reshape(depth, 1, C),
        ln1_b=stk("ln1_b").reshape(depth, 1, C),
        wq=split_heads(w_qkv[:, :, 0 * C:1 * C]).astype(bf),
        wk=split_heads(w_qkv[:, :, 1 * C:2 * C]).astype(bf),
        wv=split_heads(w_qkv[:, :, 2 * C:3 * C]).astype(bf),
        wproj=stk("w_proj").reshape(depth, heads, hd, C).astype(bf),
        b_proj=stk("b_proj").reshape(depth, 1, C),
        ln2_g=stk("ln2_g").reshape(depth, 1, C),
        ln2_b=stk("ln2_b").reshape(depth, 1, C),
        w1=stk("w1").astype(bf),
        b1=stk("b1").reshape(depth, 1, mlp),
        w2=stk("w2").astype(bf),
        b2=stk("b2").reshape(depth, 1, C),
    )


# ---------------------------------------------------------------------------
# Pure-JAX reference: mirrors the PyTorch module's math at the same precision
# policy as the kernel (bf16 matmul inputs, f32 everywhere else).
# ---------------------------------------------------------------------------
def ref_forward(x, params, *, heads):
    out = x.astype(jnp.float32)
    B, N, C = x.shape
    hd = C // heads
    scale = hd ** -0.5
    bf = jnp.bfloat16
    for lp in params:
        xn = _layer_norm_f32(out, lp["ln1_g"], lp["ln1_b"]).astype(bf)
        qkv = jnp.dot(xn, lp["w_qkv"].astype(bf),
                      preferred_element_type=jnp.float32)
        qkv = qkv.reshape(B, N, 3, heads, hd).transpose(2, 0, 3, 1, 4)
        q, k, v = qkv[0], qkv[1], qkv[2]
        attn = jnp.einsum("bhqd,bhkd->bhqk", q, k) * scale
        attn = jax.nn.softmax(attn, axis=-1)
        a = jnp.einsum("bhqk,bhkd->bhqd", attn, v)
        a = a.transpose(0, 2, 1, 3).reshape(B, N, C)
        a = jnp.dot(a.astype(bf), lp["w_proj"].astype(bf),
                    preferred_element_type=jnp.float32) + lp["b_proj"]
        out = out + a

        xn = _layer_norm_f32(out, lp["ln2_g"], lp["ln2_b"]).astype(bf)
        h = jnp.dot(xn, lp["w1"].astype(bf),
                    preferred_element_type=jnp.float32) + lp["b1"]
        h = _gelu_tanh(h)
        y = jnp.dot(h.astype(bf), lp["w2"].astype(bf),
                    preferred_element_type=jnp.float32) + lp["b2"]
        out = out + y
    return out


def init_params(key, dim, depth, mlp_dim):
    params = []
    for _ in range(depth):
        key, *ks = jax.random.split(key, 12)
        params.append(dict(
            ln1_g=1.0 + 0.1 * jax.random.normal(ks[0], (dim,), jnp.float32),
            ln1_b=0.1 * jax.random.normal(ks[1], (dim,), jnp.float32),
            w_qkv=0.05 * jax.random.normal(ks[2], (dim, 3 * dim), jnp.float32),
            w_proj=0.05 * jax.random.normal(ks[3], (dim, dim), jnp.float32),
            b_proj=0.05 * jax.random.normal(ks[4], (dim,), jnp.float32),
            ln2_g=1.0 + 0.1 * jax.random.normal(ks[5], (dim,), jnp.float32),
            ln2_b=0.1 * jax.random.normal(ks[6], (dim,), jnp.float32),
            w1=0.05 * jax.random.normal(ks[7], (dim, mlp_dim), jnp.float32),
            b1=0.05 * jax.random.normal(ks[8], (mlp_dim,), jnp.float32),
            w2=0.05 * jax.random.normal(ks[9], (mlp_dim, dim), jnp.float32),
            b2=0.05 * jax.random.normal(ks[10], (dim,), jnp.float32),
        ))
    return params


if __name__ == "__main__":
    key = jax.random.PRNGKey(0)
    kx, kp = jax.random.split(key)

    # Small but lane-dense shapes: dim / mlp_dim are multiples of 128.
    B, N = 2, 16
    dim, depth, heads, mlp_dim = 128, 2, 4, 256

    x = jax.random.normal(kx, (B, N, dim), dtype=jnp.float32)
    params = init_params(kp, dim, depth, mlp_dim)
    stacked = stack_params(params, heads)

    fwd = jax.jit(functools.partial(transformer_forward, heads=heads))
    out = fwd(x, stacked)
    jax.block_until_ready(out)

    ref = ref_forward(x, params, heads=heads)
    assert out.shape == (B, N, dim)
    err = float(jnp.max(jnp.abs(out - ref)))
    # bf16 matmul inputs + approx softmax reciprocal -> slightly loosened tol.
    assert jnp.allclose(out, ref, atol=2e-2, rtol=2e-2), f"max abs err {err}"

    print("KERNEL_OK")
</pallas_src>

<mosaic_0001>
module attributes {stable_mosaic.version = 11 : i64} {
  func.func @_fused_layer_kernel(%arg0: i32, %arg1: i32, %arg2: memref<1x16x128xf32, #tpu.memory_space<vmem>>, %arg3: memref<1x1x128xf32, #tpu.memory_space<vmem>>, %arg4: memref<1x1x128xf32, #tpu.memory_space<vmem>>, %arg5: memref<1x4x128x32xbf16, #tpu.memory_space<vmem>>, %arg6: memref<1x4x128x32xbf16, #tpu.memory_space<vmem>>, %arg7: memref<1x4x128x32xbf16, #tpu.memory_space<vmem>>, %arg8: memref<1x4x32x128xbf16, #tpu.memory_space<vmem>>, %arg9: memref<1x1x128xf32, #tpu.memory_space<vmem>>, %arg10: memref<1x1x128xf32, #tpu.memory_space<vmem>>, %arg11: memref<1x1x128xf32, #tpu.memory_space<vmem>>, %arg12: memref<1x128x256xbf16, #tpu.memory_space<vmem>>, %arg13: memref<1x1x256xf32, #tpu.memory_space<vmem>>, %arg14: memref<1x256x128xbf16, #tpu.memory_space<vmem>>, %arg15: memref<1x1x128xf32, #tpu.memory_space<vmem>>, %arg16: memref<1x16x128xf32, #tpu.memory_space<vmem>>, %arg17: memref<16x128xf32, #tpu.memory_space<vmem>>) attributes {dimension_semantics = [#tpu.dimension_semantics<parallel>, #tpu.dimension_semantics<arbitrary>], iteration_bounds = array<i64: 2, 2>, scalar_prefetch = 0 : i64, scratch_operands = 1 : i64, tpu.core_type = #tpu.core_type<tc>, window_params = [{transform_indices = @transform_0, window_bounds = array<i64: 1, 16, 128>}, {transform_indices = @transform_1, window_bounds = array<i64: 1, 1, 128>}, {transform_indices = @transform_2, window_bounds = array<i64: 1, 1, 128>}, {transform_indices = @transform_3, window_bounds = array<i64: 1, 4, 128, 32>}, {transform_indices = @transform_4, window_bounds = array<i64: 1, 4, 128, 32>}, {transform_indices = @transform_5, window_bounds = array<i64: 1, 4, 128, 32>}, {transform_indices = @transform_6, window_bounds = array<i64: 1, 4, 32, 128>}, {transform_indices = @transform_7, window_bounds = array<i64: 1, 1, 128>}, {transform_indices = @transform_8, window_bounds = array<i64: 1, 1, 128>}, {transform_indices = @transform_9, window_bounds = array<i64: 1, 1, 128>}, {transform_indices = @transform_10, window_bounds = array<i64: 1, 128, 256>}, {transform_indices = @transform_11, window_bounds = array<i64: 1, 1, 256>}, {transform_indices = @transform_12, window_bounds = array<i64: 1, 256, 128>}, {transform_indices = @transform_13, window_bounds = array<i64: 1, 1, 128>}, {transform_indices = @transform_14, window_bounds = array<i64: 1, 16, 128>}]} {
    %c0_i32 = arith.constant 0 : i32
    %0 = arith.cmpi eq, %arg1, %c0_i32 : i32
    %1 = arith.extui %0 : i1 to i32
    %c0_i32_0 = arith.constant 0 : i32
    %2 = arith.cmpi ne, %1, %c0_i32_0 : i32
    scf.if %2 {
      %c0_147 = arith.constant 0 : index
      %c0_148 = arith.constant 0 : index
      %c0_149 = arith.constant 0 : index
      %209 = vector.load %arg2[%c0_147, %c0_148, %c0_149] : memref<1x16x128xf32, #tpu.memory_space<vmem>>, vector<1x16x128xf32>
      %210 = vector.shape_cast %209 : vector<1x16x128xf32> to vector<16x128xf32>
      %c0_150 = arith.constant 0 : index
      %c0_151 = arith.constant 0 : index
      %211 = vector.load %arg17[%c0_150, %c0_151] : memref<16x128xf32, #tpu.memory_space<vmem>>, vector<16x128xf32>
      tpu.vector_store %arg17[%c0_150, %c0_151], %210 {strides = array<i32>} : memref<16x128xf32, #tpu.memory_space<vmem>>, vector<16x128xf32>,
    } else {
    }
    %c0 = arith.constant 0 : index
    %c0_1 = arith.constant 0 : index
    %3 = vector.load %arg17[%c0, %c0_1] : memref<16x128xf32, #tpu.memory_space<vmem>>, vector<16x128xf32>
    %c0_2 = arith.constant 0 : index
    %c0_3 = arith.constant 0 : index
    %c0_4 = arith.constant 0 : index
    %4 = vector.load %arg3[%c0_2, %c0_3, %c0_4] : memref<1x1x128xf32, #tpu.memory_space<vmem>>, vector<1x1x128xf32>
    %5 = vector.shape_cast %4 : vector<1x1x128xf32> to vector<1x128xf32>
    %c0_5 = arith.constant 0 : index
    %c0_6 = arith.constant 0 : index
    %c0_7 = arith.constant 0 : index
    %6 = vector.load %arg4[%c0_5, %c0_6, %c0_7] : memref<1x1x128xf32, #tpu.memory_space<vmem>>, vector<1x1x128xf32>
    %7 = vector.shape_cast %6 : vector<1x1x128xf32> to vector<1x128xf32>
    %cst = arith.constant dense<0.000000e+00> : vector<16xf32>
    %8 = vector.multi_reduction <add>, %3, %cst [1] : vector<16x128xf32> to vector<16xf32>
    %9 = vector.shape_cast %8 : vector<16xf32> to vector<16x1xf32>
    %cst_8 = arith.constant 1.280000e+02 : f32
    %10 = vector.broadcast %cst_8 : f32 to vector<16x1xf32>
    %11 = arith.divf %9, %10 : vector<16x1xf32>
    %12 = vector.broadcast %11 : vector<16x1xf32> to vector<16x128xf32>
    %13 = arith.subf %3, %12 : vector<16x128xf32>
    %14 = arith.mulf %13, %13 : vector<16x128xf32>
    %cst_9 = arith.constant dense<0.000000e+00> : vector<16xf32>
    %15 = vector.multi_reduction <add>, %14, %cst_9 [1] : vector<16x128xf32> to vector<16xf32>
    %16 = vector.shape_cast %15 : vector<16xf32> to vector<16x1xf32>
    %cst_10 = arith.constant 1.280000e+02 : f32
    %17 = vector.broadcast %cst_10 : f32 to vector<16x1xf32>
    %18 = arith.divf %16, %17 : vector<16x1xf32>
    %19 = vector.broadcast %11 : vector<16x1xf32> to vector<16x128xf32>
    %20 = arith.subf %3, %19 : vector<16x128xf32>
    %cst_11 = arith.constant 9.99999974E-6 : f32
    %21 = vector.broadcast %cst_11 : f32 to vector<16x1xf32>
    %22 = arith.addf %18, %21 : vector<16x1xf32>
    %23 = math.rsqrt %22 : vector<16x1xf32>
    %24 = vector.broadcast %23 : vector<16x1xf32> to vector<16x128xf32>
    %25 = arith.mulf %20, %24 : vector<16x128xf32>
    %26 = vector.broadcast %5 : vector<1x128xf32> to vector<16x128xf32>
    %27 = arith.mulf %25, %26 : vector<16x128xf32>
    %28 = vector.broadcast %7 : vector<1x128xf32> to vector<16x128xf32>
    %29 = arith.addf %27, %28 : vector<16x128xf32>
    %30 = arith.truncf %29 : vector<16x128xf32> to vector<16x128xbf16>
    %cst_12 = arith.constant 0.000000e+00 : f32
    %31 = vector.broadcast %cst_12 : f32 to vector<16x128xf32>
    %c0_13 = arith.constant 0 : index
    %c0_14 = arith.constant 0 : index
    %c0_15 = arith.constant 0 : index
    %c0_16 = arith.constant 0 : index
    %32 = vector.load %arg5[%c0_13, %c0_14, %c0_15, %c0_16] : memref<1x4x128x32xbf16, #tpu.memory_space<vmem>>, vector<1x1x128x32xbf16>
    %33 = vector.shape_cast %32 : vector<1x1x128x32xbf16> to vector<128x32xbf16>
    %cst_17 = arith.constant dense<0.000000e+00> : vector<16x32xf32>
    %34 = tpu.matmul %30, %33, %cst_17 {dimension_numbers = #tpu.dot_dimension_numbers<[1], [0], [0], [1], [0, 0, 1, 1], [], []>} : vector<16x128xbf16>, vector<128x32xbf16>, vector<16x32xf32> -> vector<16x32xf32>
    %c0_18 = arith.constant 0 : index
    %c0_19 = arith.constant 0 : index
    %c0_20 = arith.constant 0 : index
    %c0_21 = arith.constant 0 : index
    %35 = vector.load %arg6[%c0_18, %c0_19, %c0_20, %c0_21] : memref<1x4x128x32xbf16, #tpu.memory_space<vmem>>, vector<1x1x128x32xbf16>
    %36 = vector.shape_cast %35 : vector<1x1x128x32xbf16> to vector<128x32xbf16>
    %cst_22 = arith.constant dense<0.000000e+00> : vector<16x32xf32>
    %37 = tpu.matmul %30, %36, %cst_22 {dimension_numbers = #tpu.dot_dimension_numbers<[1], [0], [0], [1], [0, 0, 1, 1], [], []>} : vector<16x128xbf16>, vector<128x32xbf16>, vector<16x32xf32> -> vector<16x32xf32>
    %c0_23 = arith.constant 0 : index
    %c0_24 = arith.constant 0 : index
    %c0_25 = arith.constant 0 : index
    %c0_26 = arith.constant 0 : index
    %38 = vector.load %arg7[%c0_23, %c0_24, %c0_25, %c0_26] : memref<1x4x128x32xbf16, #tpu.memory_space<vmem>>, vector<1x1x128x32xbf16>
    %39 = vector.shape_cast %38 : vector<1x1x128x32xbf16> to vector<128x32xbf16>
    %cst_27 = arith.constant dense<0.000000e+00> : vector<16x32xf32>
    %40 = tpu.matmul %30, %39, %cst_27 {dimension_numbers = #tpu.dot_dimension_numbers<[1], [0], [0], [1], [0, 0, 1, 1], [], []>} : vector<16x128xbf16>, vector<128x32xbf16>, vector<16x32xf32> -> vector<16x32xf32>
    %cst_28 = arith.constant dense<0.000000e+00> : vector<16x16xf32>
    %41 = tpu.matmul %34, %37, %cst_28 {dimension_numbers = #tpu.dot_dimension_numbers<[1], [1], [0], [0], [0, 0, 1, 0], [], []>} : vector<16x32xf32>, vector<16x32xf32>, vector<16x16xf32> -> vector<16x16xf32>
    %cst_29 = arith.constant 0.176776692 : f32
    %42 = vector.broadcast %cst_29 : f32 to vector<16x16xf32>
    %43 = arith.mulf %41, %42 : vector<16x16xf32>
    %cst_30 = arith.constant dense<0xFF800000> : vector<16xf32>
    %44 = vector.multi_reduction <maximumf>, %43, %cst_30 [1] : vector<16x16xf32> to vector<16xf32>
    %45 = vector.shape_cast %44 : vector<16xf32> to vector<16x1xf32>
    %46 = vector.broadcast %45 : vector<16x1xf32> to vector<16x16xf32>
    %47 = arith.subf %43, %46 : vector<16x16xf32>
    %48 = math.exp %47 : vector<16x16xf32>
    %cst_31 = arith.constant dense<0.000000e+00> : vector<16xf32>
    %49 = vector.multi_reduction <add>, %48, %cst_31 [1] : vector<16x16xf32> to vector<16xf32>
    %50 = vector.shape_cast %49 : vector<16xf32> to vector<16x1xf32>
    %51 = tpu.reciprocal %50 {approx = true} : vector<16x1xf32> -> vector<16x1xf32>
    %52 = vector.broadcast %51 : vector<16x1xf32> to vector<16x16xf32>
    %53 = arith.mulf %48, %52 : vector<16x16xf32>
    %cst_32 = arith.constant dense<0.000000e+00> : vector<16x32xf32>
    %54 = tpu.matmul %53, %40, %cst_32 {dimension_numbers = #tpu.dot_dimension_numbers<[1], [0], [0], [1], [0, 0, 1, 1], [], []>} : vector<16x16xf32>, vector<16x32xf32>, vector<16x32xf32> -> vector<16x32xf32>
    %55 = arith.truncf %54 : vector<16x32xf32> to vector<16x32xbf16>
    %c0_33 = arith.constant 0 : index
    %c0_34 = arith.constant 0 : index
    %c0_35 = arith.constant 0 : index
    %c0_36 = arith.constant 0 : index
    %56 = vector.load %arg8[%c0_33, %c0_34, %c0_35, %c0_36] : memref<1x4x32x128xbf16, #tpu.memory_space<vmem>>, vector<1x1x32x128xbf16>
    %57 = vector.shape_cast %56 : vector<1x1x32x128xbf16> to vector<32x128xbf16>
    %cst_37 = arith.constant dense<0.000000e+00> : vector<16x128xf32>
    %58 = tpu.matmul %55, %57, %cst_37 {dimension_numbers = #tpu.dot_dimension_numbers<[1], [0], [0], [1], [0, 0, 1, 1], [], []>} : vector<16x32xbf16>, vector<32x128xbf16>, vector<16x128xf32> -> vector<16x128xf32>
    %59 = arith.addf %31, %58 : vector<16x128xf32>
    %c0_38 = arith.constant 0 : index
    %c1 = arith.constant 1 : index
    %c0_39 = arith.constant 0 : index
    %c0_40 = arith.constant 0 : index
    %60 = vector.load %arg5[%c0_38, %c1, %c0_39, %c0_40] : memref<1x4x128x32xbf16, #tpu.memory_space<vmem>>, vector<1x1x128x32xbf16>
    %61 = vector.shape_cast %60 : vector<1x1x128x32xbf16> to vector<128x32xbf16>
    %cst_41 = arith.constant dense<0.000000e+00> : vector<16x32xf32>
    %62 = tpu.matmul %30, %61, %cst_41 {dimension_numbers = #tpu.dot_dimension_numbers<[1], [0], [0], [1], [0, 0, 1, 1], [], []>} : vector<16x128xbf16>, vector<128x32xbf16>, vector<16x32xf32> -> vector<16x32xf32>
    %c0_42 = arith.constant 0 : index
    %c1_43 = arith.constant 1 : index
    %c0_44 = arith.constant 0 : index
    %c0_45 = arith.constant 0 : index
    %63 = vector.load %arg6[%c0_42, %c1_43, %c0_44, %c0_45] : memref<1x4x128x32xbf16, #tpu.memory_space<vmem>>, vector<1x1x128x32xbf16>
    %64 = vector.shape_cast %63 : vector<1x1x128x32xbf16> to vector<128x32xbf16>
    %cst_46 = arith.constant dense<0.000000e+00> : vector<16x32xf32>
    %65 = tpu.matmul %30, %64, %cst_46 {dimension_numbers = #tpu.dot_dimension_numbers<[1], [0], [0], [1], [0, 0, 1, 1], [], []>} : vector<16x128xbf16>, vector<128x32xbf16>, vector<16x32xf32> -> vector<16x32xf32>
    %c0_47 = arith.constant 0 : index
    %c1_48 = arith.constant 1 : index
    %c0_49 = arith.constant 0 : index
    %c0_50 = arith.constant 0 : index
    %66 = vector.load %arg7[%c0_47, %c1_48, %c0_49, %c0_50] : memref<1x4x128x32xbf16, #tpu.memory_space<vmem>>, vector<1x1x128x32xbf16>
    %67 = vector.shape_cast %66 : vector<1x1x128x32xbf16> to vector<128x32xbf16>
    %cst_51 = arith.constant dense<0.000000e+00> : vector<16x32xf32>
    %68 = tpu.matmul %30, %67, %cst_51 {dimension_numbers = #tpu.dot_dimension_numbers<[1], [0], [0], [1], [0, 0, 1, 1], [], []>} : vector<16x128xbf16>, vector<128x32xbf16>, vector<16x32xf32> -> vector<16x32xf32>
    %cst_52 = arith.constant dense<0.000000e+00> : vector<16x16xf32>
    %69 = tpu.matmul %62, %65, %cst_52 {dimension_numbers = #tpu.dot_dimension_numbers<[1], [1], [0], [0], [0, 0, 1, 0], [], []>} : vector<16x32xf32>, vector<16x32xf32>, vector<16x16xf32> -> vector<16x16xf32>
    %cst_53 = arith.constant 0.176776692 : f32
    %70 = vector.broadcast %cst_53 : f32 to vector<16x16xf32>
    %71 = arith.mulf %69, %70 : vector<16x16xf32>
    %cst_54 = arith.constant dense<0xFF800000> : vector<16xf32>
    %72 = vector.multi_reduction <maximumf>, %71, %cst_54 [1] : vector<16x16xf32> to vector<16xf32>
    %73 = vector.shape_cast %72 : vector<16xf32> to vector<16x1xf32>
    %74 = vector.broadcast %73 : vector<16x1xf32> to vector<16x16xf32>
    %75 = arith.subf %71, %74 : vector<16x16xf32>
    %76 = math.exp %75 : vector<16x16xf32>
    %cst_55 = arith.constant dense<0.000000e+00> : vector<16xf32>
    %77 = vector.multi_reduction <add>, %76, %cst_55 [1] : vector<16x16xf32> to vector<16xf32>
    %78 = vector.shape_cast %77 : vector<16xf32> to vector<16x1xf32>
    %79 = tpu.reciprocal %78 {approx = true} : vector<16x1xf32> -> vector<16x1xf32>
    %80 = vector.broadcast %79 : vector<16x1xf32> to vector<16x16xf32>
    %81 = arith.mulf %76, %80 : vector<16x16xf32>
    %cst_56 = arith.constant dense<0.000000e+00> : vector<16x32xf32>
    %82 = tpu.matmul %81, %68, %cst_56 {dimension_numbers = #tpu.dot_dimension_numbers<[1], [0], [0], [1], [0, 0, 1, 1], [], []>} : vector<16x16xf32>, vector<16x32xf32>, vector<16x32xf32> -> vector<16x32xf32>
    %83 = arith.truncf %82 : vector<16x32xf32> to vector<16x32xbf16>
    %c0_57 = arith.constant 0 : index
    %c1_58 = arith.constant 1 : index
    %c0_59 = arith.constant 0 : index
    %c0_60 = arith.constant 0 : index
    %84 = vector.load %arg8[%c0_57, %c1_58, %c0_59, %c0_60] : memref<1x4x32x128xbf16, #tpu.memory_space<vmem>>, vector<1x1x32x128xbf16>
    %85 = vector.shape_cast %84 : vector<1x1x32x128xbf16> to vector<32x128xbf16>
    %cst_61 = arith.constant dense<0.000000e+00> : vector<16x128xf32>
    %86 = tpu.matmul %83, %85, %cst_61 {dimension_numbers = #tpu.dot_dimension_numbers<[1], [0], [0], [1], [0, 0, 1, 1], [], []>} : vector<16x32xbf16>, vector<32x128xbf16>, vector<16x128xf32> -> vector<16x128xf32>
    %87 = arith.addf %59, %86 : vector<16x128xf32>
    %c0_62 = arith.constant 0 : index
    %c2 = arith.constant 2 : index
    %c0_63 = arith.constant 0 : index
    %c0_64 = arith.constant 0 : index
    %88 = vector.load %arg5[%c0_62, %c2, %c0_63, %c0_64] : memref<1x4x128x32xbf16, #tpu.memory_space<vmem>>, vector<1x1x128x32xbf16>
    %89 = vector.shape_cast %88 : vector<1x1x128x32xbf16> to vector<128x32xbf16>
    %cst_65 = arith.constant dense<0.000000e+00> : vector<16x32xf32>
    %90 = tpu.matmul %30, %89, %cst_65 {dimension_numbers = #tpu.dot_dimension_numbers<[1], [0], [0], [1], [0, 0, 1, 1], [], []>} : vector<16x128xbf16>, vector<128x32xbf16>, vector<16x32xf32> -> vector<16x32xf32>
    %c0_66 = arith.constant 0 : index
    %c2_67 = arith.constant 2 : index
    %c0_68 = arith.constant 0 : index
    %c0_69 = arith.constant 0 : index
    %91 = vector.load %arg6[%c0_66, %c2_67, %c0_68, %c0_69] : memref<1x4x128x32xbf16, #tpu.memory_space<vmem>>, vector<1x1x128x32xbf16>
    %92 = vector.shape_cast %91 : vector<1x1x128x32xbf16> to vector<128x32xbf16>
    %cst_70 = arith.constant dense<0.000000e+00> : vector<16x32xf32>
    %93 = tpu.matmul %30, %92, %cst_70 {dimension_numbers = #tpu.dot_dimension_numbers<[1], [0], [0], [1], [0, 0, 1, 1], [], []>} : vector<16x128xbf16>, vector<128x32xbf16>, vector<16x32xf32> -> vector<16x32xf32>
    %c0_71 = arith.constant 0 : index
    %c2_72 = arith.constant 2 : index
    %c0_73 = arith.constant 0 : index
    %c0_74 = arith.constant 0 : index
    %94 = vector.load %arg7[%c0_71, %c2_72, %c0_73, %c0_74] : memref<1x4x128x32xbf16, #tpu.memory_space<vmem>>, vector<1x1x128x32xbf16>
    %95 = vector.shape_cast %94 : vector<1x1x128x32xbf16> to vector<128x32xbf16>
    %cst_75 = arith.constant dense<0.000000e+00> : vector<16x32xf32>
    %96 = tpu.matmul %30, %95, %cst_75 {dimension_numbers = #tpu.dot_dimension_numbers<[1], [0], [0], [1], [0, 0, 1, 1], [], []>} : vector<16x128xbf16>, vector<128x32xbf16>, vector<16x32xf32> -> vector<16x32xf32>
    %cst_76 = arith.constant dense<0.000000e+00> : vector<16x16xf32>
    %97 = tpu.matmul %90, %93, %cst_76 {dimension_numbers = #tpu.dot_dimension_numbers<[1], [1], [0], [0], [0, 0, 1, 0], [], []>} : vector<16x32xf32>, vector<16x32xf32>, vector<16x16xf32> -> vector<16x16xf32>
    %cst_77 = arith.constant 0.176776692 : f32
    %98 = vector.broadcast %cst_77 : f32 to vector<16x16xf32>
    %99 = arith.mulf %97, %98 : vector<16x16xf32>
    %cst_78 = arith.constant dense<0xFF800000> : vector<16xf32>
    %100 = vector.multi_reduction <maximumf>, %99, %cst_78 [1] : vector<16x16xf32> to vector<16xf32>
    %101 = vector.shape_cast %100 : vector<16xf32> to vector<16x1xf32>
    %102 = vector.broadcast %101 : vector<16x1xf32> to vector<16x16xf32>
    %103 = arith.subf %99, %102 : vector<16x16xf32>
    %104 = math.exp %103 : vector<16x16xf32>
    %cst_79 = arith.constant dense<0.000000e+00> : vector<16xf32>
    %105 = vector.multi_reduction <add>, %104, %cst_79 [1] : vector<16x16xf32> to vector<16xf32>
    %106 = vector.shape_cast %105 : vector<16xf32> to vector<16x1xf32>
    %107 = tpu.reciprocal %106 {approx = true} : vector<16x1xf32> -> vector<16x1xf32>
    %108 = vector.broadcast %107 : vector<16x1xf32> to vector<16x16xf32>
    %109 = arith.mulf %104, %108 : vector<16x16xf32>
    %cst_80 = arith.constant dense<0.000000e+00> : vector<16x32xf32>
    %110 = tpu.matmul %109, %96, %cst_80 {dimension_numbers = #tpu.dot_dimension_numbers<[1], [0], [0], [1], [0, 0, 1, 1], [], []>} : vector<16x16xf32>, vector<16x32xf32>, vector<16x32xf32> -> vector<16x32xf32>
    %111 = arith.truncf %110 : vector<16x32xf32> to vector<16x32xbf16>
    %c0_81 = arith.constant 0 : index
    %c2_82 = arith.constant 2 : index
    %c0_83 = arith.constant 0 : index
    %c0_84 = arith.constant 0 : index
    %112 = vector.load %arg8[%c0_81, %c2_82, %c0_83, %c0_84] : memref<1x4x32x128xbf16, #tpu.memory_space<vmem>>, vector<1x1x32x128xbf16>
    %113 = vector.shape_cast %112 : vector<1x1x32x128xbf16> to vector<32x128xbf16>
    %cst_85 = arith.constant dense<0.000000e+00> : vector<16x128xf32>
    %114 = tpu.matmul %111, %113, %cst_85 {dimension_numbers = #tpu.dot_dimension_numbers<[1], [0], [0], [1], [0, 0, 1, 1], [], []>} : vector<16x32xbf16>, vector<32x128xbf16>, vector<16x128xf32> -> vector<16x128xf32>
    %115 = arith.addf %87, %114 : vector<16x128xf32>
    %c0_86 = arith.constant 0 : index
    %c3 = arith.constant 3 : index
    %c0_87 = arith.constant 0 : index
    %c0_88 = arith.constant 0 : index
    %116 = vector.load %arg5[%c0_86, %c3, %c0_87, %c0_88] : memref<1x4x128x32xbf16, #tpu.memory_space<vmem>>, vector<1x1x128x32xbf16>
    %117 = vector.shape_cast %116 : vector<1x1x128x32xbf16> to vector<128x32xbf16>
    %cst_89 = arith.constant dense<0.000000e+00> : vector<16x32xf32>
    %118 = tpu.matmul %30, %117, %cst_89 {dimension_numbers = #tpu.dot_dimension_numbers<[1], [0], [0], [1], [0, 0, 1, 1], [], []>} : vector<16x128xbf16>, vector<128x32xbf16>, vector<16x32xf32> -> vector<16x32xf32>
    %c0_90 = arith.constant 0 : index
    %c3_91 = arith.constant 3 : index
    %c0_92 = arith.constant 0 : index
    %c0_93 = arith.constant 0 : index
    %119 = vector.load %arg6[%c0_90, %c3_91, %c0_92, %c0_93] : memref<1x4x128x32xbf16, #tpu.memory_space<vmem>>, vector<1x1x128x32xbf16>
    %120 = vector.shape_cast %119 : vector<1x1x128x32xbf16> to vector<128x32xbf16>
    %cst_94 = arith.constant dense<0.000000e+00> : vector<16x32xf32>
    %121 = tpu.matmul %30, %120, %cst_94 {dimension_numbers = #tpu.dot_dimension_numbers<[1], [0], [0], [1], [0, 0, 1, 1], [], []>} : vector<16x128xbf16>, vector<128x32xbf16>, vector<16x32xf32> -> vector<16x32xf32>
    %c0_95 = arith.constant 0 : index
    %c3_96 = arith.constant 3 : index
    %c0_97 = arith.constant 0 : index
    %c0_98 = arith.constant 0 : index
    %122 = vector.load %arg7[%c0_95, %c3_96, %c0_97, %c0_98] : memref<1x4x128x32xbf16, #tpu.memory_space<vmem>>, vector<1x1x128x32xbf16>
    %123 = vector.shape_cast %122 : vector<1x1x128x32xbf16> to vector<128x32xbf16>
    %cst_99 = arith.constant dense<0.000000e+00> : vector<16x32xf32>
    %124 = tpu.matmul %30, %123, %cst_99 {dimension_numbers = #tpu.dot_dimension_numbers<[1], [0], [0], [1], [0, 0, 1, 1], [], []>} : vector<16x128xbf16>, vector<128x32xbf16>, vector<16x32xf32> -> vector<16x32xf32>
    %cst_100 = arith.constant dense<0.000000e+00> : vector<16x16xf32>
    %125 = tpu.matmul %118, %121, %cst_100 {dimension_numbers = #tpu.dot_dimension_numbers<[1], [1], [0], [0], [0, 0, 1, 0], [], []>} : vector<16x32xf32>, vector<16x32xf32>, vector<16x16xf32> -> vector<16x16xf32>
    %cst_101 = arith.constant 0.176776692 : f32
    %126 = vector.broadcast %cst_101 : f32 to vector<16x16xf32>
    %127 = arith.mulf %125, %126 : vector<16x16xf32>
    %cst_102 = arith.constant dense<0xFF800000> : vector<16xf32>
    %128 = vector.multi_reduction <maximumf>, %127, %cst_102 [1] : vector<16x16xf32> to vector<16xf32>
    %129 = vector.shape_cast %128 : vector<16xf32> to vector<16x1xf32>
    %130 = vector.broadcast %129 : vector<16x1xf32> to vector<16x16xf32>
    %131 = arith.subf %127, %130 : vector<16x16xf32>
    %132 = math.exp %131 : vector<16x16xf32>
    %cst_103 = arith.constant dense<0.000000e+00> : vector<16xf32>
    %133 = vector.multi_reduction <add>, %132, %cst_103 [1] : vector<16x16xf32> to vector<16xf32>
    %134 = vector.shape_cast %133 : vector<16xf32> to vector<16x1xf32>
    %135 = tpu.reciprocal %134 {approx = true} : vector<16x1xf32> -> vector<16x1xf32>
    %136 = vector.broadcast %135 : vector<16x1xf32> to vector<16x16xf32>
    %137 = arith.mulf %132, %136 : vector<16x16xf32>
    %cst_104 = arith.constant dense<0.000000e+00> : vector<16x32xf32>
    %138 = tpu.matmul %137, %124, %cst_104 {dimension_numbers = #tpu.dot_dimension_numbers<[1], [0], [0], [1], [0, 0, 1, 1], [], []>} : vector<16x16xf32>, vector<16x32xf32>, vector<16x32xf32> -> vector<16x32xf32>
    %139 = arith.truncf %138 : vector<16x32xf32> to vector<16x32xbf16>
    %c0_105 = arith.constant 0 : index
    %c3_106 = arith.constant 3 : index
    %c0_107 = arith.constant 0 : index
    %c0_108 = arith.constant 0 : index
    %140 = vector.load %arg8[%c0_105, %c3_106, %c0_107, %c0_108] : memref<1x4x32x128xbf16, #tpu.memory_space<vmem>>, vector<1x1x32x128xbf16>
    %141 = vector.shape_cast %140 : vector<1x1x32x128xbf16> to vector<32x128xbf16>
    %cst_109 = arith.constant dense<0.000000e+00> : vector<16x128xf32>
    %142 = tpu.matmul %139, %141, %cst_109 {dimension_numbers = #tpu.dot_dimension_numbers<[1], [0], [0], [1], [0, 0, 1, 1], [], []>} : vector<16x32xbf16>, vector<32x128xbf16>, vector<16x128xf32> -> vector<16x128xf32>
    %143 = arith.addf %115, %142 : vector<16x128xf32>
    %c0_110 = arith.constant 0 : index
    %c0_111 = arith.constant 0 : index
    %c0_112 = arith.constant 0 : index
    %144 = vector.load %arg9[%c0_110, %c0_111, %c0_112] : memref<1x1x128xf32, #tpu.memory_space<vmem>>, vector<1x1x128xf32>
    %145 = vector.shape_cast %144 : vector<1x1x128xf32> to vector<1x128xf32>
    %146 = vector.broadcast %145 : vector<1x128xf32> to vector<16x128xf32>
    %147 = arith.addf %143, %146 : vector<16x128xf32>
    %148 = arith.addf %3, %147 : vector<16x128xf32>
    %c0_113 = arith.constant 0 : index
    %c0_114 = arith.constant 0 : index
    %c0_115 = arith.constant 0 : index
    %149 = vector.load %arg10[%c0_113, %c0_114, %c0_115] : memref<1x1x128xf32, #tpu.memory_space<vmem>>, vector<1x1x128xf32>
    %150 = vector.shape_cast %149 : vector<1x1x128xf32> to vector<1x128xf32>
    %c0_116 = arith.constant 0 : index
    %c0_117 = arith.constant 0 : index
    %c0_118 = arith.constant 0 : index
    %151 = vector.load %arg11[%c0_116, %c0_117, %c0_118] : memref<1x1x128xf32, #tpu.memory_space<vmem>>, vector<1x1x128xf32>
    %152 = vector.shape_cast %151 : vector<1x1x128xf32> to vector<1x128xf32>
    %cst_119 = arith.constant dense<0.000000e+00> : vector<16xf32>
    %153 = vector.multi_reduction <add>, %148, %cst_119 [1] : vector<16x128xf32> to vector<16xf32>
    %154 = vector.shape_cast %153 : vector<16xf32> to vector<16x1xf32>
    %cst_120 = arith.constant 1.280000e+02 : f32
    %155 = vector.broadcast %cst_120 : f32 to vector<16x1xf32>
    %156 = arith.divf %154, %155 : vector<16x1xf32>
    %157 = vector.broadcast %156 : vector<16x1xf32> to vector<16x128xf32>
    %158 = arith.subf %148, %157 : vector<16x128xf32>
    %159 = arith.mulf %158, %158 : vector<16x128xf32>
    %cst_121 = arith.constant dense<0.000000e+00> : vector<16xf32>
    %160 = vector.multi_reduction <add>, %159, %cst_121 [1] : vector<16x128xf32> to vector<16xf32>
    %161 = vector.shape_cast %160 : vector<16xf32> to vector<16x1xf32>
    %cst_122 = arith.constant 1.280000e+02 : f32
    %162 = vector.broadcast %cst_122 : f32 to vector<16x1xf32>
    %163 = arith.divf %161, %162 : vector<16x1xf32>
    %164 = vector.broadcast %156 : vector<16x1xf32> to vector<16x128xf32>
    %165 = arith.subf %148, %164 : vector<16x128xf32>
    %cst_123 = arith.constant 9.99999974E-6 : f32
    %166 = vector.broadcast %cst_123 : f32 to vector<16x1xf32>
    %167 = arith.addf %163, %166 : vector<16x1xf32>
    %168 = math.rsqrt %167 : vector<16x1xf32>
    %169 = vector.broadcast %168 : vector<16x1xf32> to vector<16x128xf32>
    %170 = arith.mulf %165, %169 : vector<16x128xf32>
    %171 = vector.broadcast %150 : vector<1x128xf32> to vector<16x128xf32>
    %172 = arith.mulf %170, %171 : vector<16x128xf32>
    %173 = vector.broadcast %152 : vector<1x128xf32> to vector<16x128xf32>
    %174 = arith.addf %172, %173 : vector<16x128xf32>
    %175 = arith.truncf %174 : vector<16x128xf32> to vector<16x128xbf16>
    %c0_124 = arith.constant 0 : index
    %c0_125 = arith.constant 0 : index
    %c0_126 = arith.constant 0 : index
    %176 = vector.load %arg12[%c0_124, %c0_125, %c0_126] : memref<1x128x256xbf16, #tpu.memory_space<vmem>>, vector<1x128x256xbf16>
    %177 = vector.shape_cast %176 : vector<1x128x256xbf16> to vector<128x256xbf16>
    %cst_127 = arith.constant dense<0.000000e+00> : vector<16x256xf32>
    %178 = tpu.matmul %175, %177, %cst_127 {dimension_numbers = #tpu.dot_dimension_numbers<[1], [0], [0], [1], [0, 0, 1, 1], [], []>} : vector<16x128xbf16>, vector<128x256xbf16>, vector<16x256xf32> -> vector<16x256xf32>
    %c0_128 = arith.constant 0 : index
    %c0_129 = arith.constant 0 : index
    %c0_130 = arith.constant 0 : index
    %179 = vector.load %arg13[%c0_128, %c0_129, %c0_130] : memref<1x1x256xf32, #tpu.memory_space<vmem>>, vector<1x1x256xf32>
    %180 = vector.shape_cast %179 : vector<1x1x256xf32> to vector<1x256xf32>
    %181 = vector.broadcast %180 : vector<1x256xf32> to vector<16x256xf32>
    %182 = arith.addf %178, %181 : vector<16x256xf32>
    %cst_131 = arith.constant 5.000000e-01 : f32
    %183 = vector.broadcast %cst_131 : f32 to vector<16x256xf32>
    %184 = arith.mulf %183, %182 : vector<16x256xf32>
    %cst_132 = arith.constant 4.471500e-02 : f32
    %185 = vector.broadcast %cst_132 : f32 to vector<16x256xf32>
    %186 = arith.mulf %185, %182 : vector<16x256xf32>
    %187 = arith.mulf %186, %182 : vector<16x256xf32>
    %188 = arith.mulf %187, %182 : vector<16x256xf32>
    %189 = arith.addf %182, %188 : vector<16x256xf32>
    %cst_133 = arith.constant 0.797884583 : f32
    %190 = vector.broadcast %cst_133 : f32 to vector<16x256xf32>
    %191 = arith.mulf %190, %189 : vector<16x256xf32>
    %192 = math.tanh %191 : vector<16x256xf32>
    %cst_134 = arith.constant 1.000000e+00 : f32
    %193 = vector.broadcast %cst_134 : f32 to vector<16x256xf32>
    %194 = arith.addf %193, %192 : vector<16x256xf32>
    %195 = arith.mulf %184, %194 : vector<16x256xf32>
    %196 = arith.truncf %195 : vector<16x256xf32> to vector<16x256xbf16>
    %c0_135 = arith.constant 0 : index
    %c0_136 = arith.constant 0 : index
    %c0_137 = arith.constant 0 : index
    %197 = vector.load %arg14[%c0_135, %c0_136, %c0_137] : memref<1x256x128xbf16, #tpu.memory_space<vmem>>, vector<1x256x128xbf16>
    %198 = vector.shape_cast %197 : vector<1x256x128xbf16> to vector<256x128xbf16>
    %cst_138 = arith.constant dense<0.000000e+00> : vector<16x128xf32>
    %199 = tpu.matmul %196, %198, %cst_138 {dimension_numbers = #tpu.dot_dimension_numbers<[1], [0], [0], [1], [0, 0, 1, 1], [], []>} : vector<16x256xbf16>, vector<256x128xbf16>, vector<16x128xf32> -> vector<16x128xf32>
    %c0_139 = arith.constant 0 : index
    %c0_140 = arith.constant 0 : index
    %c0_141 = arith.constant 0 : index
    %200 = vector.load %arg15[%c0_139, %c0_140, %c0_141] : memref<1x1x128xf32, #tpu.memory_space<vmem>>, vector<1x1x128xf32>
    %201 = vector.shape_cast %200 : vector<1x1x128xf32> to vector<1x128xf32>
    %202 = vector.broadcast %201 : vector<1x128xf32> to vector<16x128xf32>
    %203 = arith.addf %199, %202 : vector<16x128xf32>
    %204 = arith.addf %148, %203 : vector<16x128xf32>
    %c0_142 = arith.constant 0 : index
    %c0_143 = arith.constant 0 : index
    %205 = vector.load %arg17[%c0_142, %c0_143] : memref<16x128xf32, #tpu.memory_space<vmem>>, vector<16x128xf32>
    tpu.vector_store %arg17[%c0_142, %c0_143], %204 {strides = array<i32>} : memref<16x128xf32, #tpu.memory_space<vmem>>, vector<16x128xf32>,
    %c0_144 = arith.constant 0 : index
    %c0_145 = arith.constant 0 : index
    %c0_146 = arith.constant 0 : index
    %206 = vector.load %arg16[%c0_144, %c0_145, %c0_146] : memref<1x16x128xf32, #tpu.memory_space<vmem>>, vector<1x16x128xf32>
    %207 = vector.shape_cast %206 : vector<1x16x128xf32> to vector<16x128xf32>
    %208 = vector.shape_cast %204 : vector<16x128xf32> to vector<1x16x128xf32>
    tpu.vector_store %arg16[%c0_144, %c0_145, %c0_146], %208 {strides = array<i32>} : memref<1x16x128xf32, #tpu.memory_space<vmem>>, vector<1x16x128xf32>,
    return
  }
  func.func @transform_0(%arg0: i32, %arg1: i32) -> (i32, i32, i32) {
    %c0_i32 = arith.constant 0 : i32
    %c0_i32_0 = arith.constant 0 : i32
    %c0_i32_1 = arith.constant 0 : i32
    return %arg0, %c0_i32, %c0_i32_0 : i32, i32, i32
  }
  func.func @transform_1(%arg0: i32, %arg1: i32) -> (i32, i32, i32) {
    %c0_i32 = arith.constant 0 : i32
    %c0_i32_0 = arith.constant 0 : i32
    %c0_i32_1 = arith.constant 0 : i32
    return %arg1, %c0_i32, %c0_i32_0 : i32, i32, i32
  }
  func.func @transform_2(%arg0: i32, %arg1: i32) -> (i32, i32, i32) {
    %c0_i32 = arith.constant 0 : i32
    %c0_i32_0 = arith.constant 0 : i32
    %c0_i32_1 = arith.constant 0 : i32
    return %arg1, %c0_i32, %c0_i32_0 : i32, i32, i32
  }
  func.func @transform_3(%arg0: i32, %arg1: i32) -> (i32, i32, i32, i32) {
    %c0_i32 = arith.constant 0 : i32
    %c0_i32_0 = arith.constant 0 : i32
    %c0_i32_1 = arith.constant 0 : i32
    %c0_i32_2 = arith.constant 0 : i32
    return %arg1, %c0_i32, %c0_i32_0, %c0_i32_1 : i32, i32, i32, i32
  }
  func.func @transform_4(%arg0: i32, %arg1: i32) -> (i32, i32, i32, i32) {
    %c0_i32 = arith.constant 0 : i32
    %c0_i32_0 = arith.constant 0 : i32
    %c0_i32_1 = arith.constant 0 : i32
    %c0_i32_2 = arith.constant 0 : i32
    return %arg1, %c0_i32, %c0_i32_0, %c0_i32_1 : i32, i32, i32, i32
  }
  func.func @transform_5(%arg0: i32, %arg1: i32) -> (i32, i32, i32, i32) {
    %c0_i32 = arith.constant 0 : i32
    %c0_i32_0 = arith.constant 0 : i32
    %c0_i32_1 = arith.constant 0 : i32
    %c0_i32_2 = arith.constant 0 : i32
    return %arg1, %c0_i32, %c0_i32_0, %c0_i32_1 : i32, i32, i32, i32
  }
  func.func @transform_6(%arg0: i32, %arg1: i32) -> (i32, i32, i32, i32) {
    %c0_i32 = arith.constant 0 : i32
    %c0_i32_0 = arith.constant 0 : i32
    %c0_i32_1 = arith.constant 0 : i32
    %c0_i32_2 = arith.constant 0 : i32
    return %arg1, %c0_i32, %c0_i32_0, %c0_i32_1 : i32, i32, i32, i32
  }
  func.func @transform_7(%arg0: i32, %arg1: i32) -> (i32, i32, i32) {
    %c0_i32 = arith.constant 0 : i32
    %c0_i32_0 = arith.constant 0 : i32
    %c0_i32_1 = arith.constant 0 : i32
    return %arg1, %c0_i32, %c0_i32_0 : i32, i32, i32
  }
  func.func @transform_8(%arg0: i32, %arg1: i32) -> (i32, i32, i32) {
    %c0_i32 = arith.constant 0 : i32
    %c0_i32_0 = arith.constant 0 : i32
    %c0_i32_1 = arith.constant 0 : i32
    return %arg1, %c0_i32, %c0_i32_0 : i32, i32, i32
  }
  func.func @transform_9(%arg0: i32, %arg1: i32) -> (i32, i32, i32) {
    %c0_i32 = arith.constant 0 : i32
    %c0_i32_0 = arith.constant 0 : i32
    %c0_i32_1 = arith.constant 0 : i32
    return %arg1, %c0_i32, %c0_i32_0 : i32, i32, i32
  }
  func.func @transform_10(%arg0: i32, %arg1: i32) -> (i32, i32, i32) {
    %c0_i32 = arith.constant 0 : i32
    %c0_i32_0 = arith.constant 0 : i32
    %c0_i32_1 = arith.constant 0 : i32
    return %arg1, %c0_i32, %c0_i32_0 : i32, i32, i32
  }
  func.func @transform_11(%arg0: i32, %arg1: i32) -> (i32, i32, i32) {
    %c0_i32 = arith.constant 0 : i32
    %c0_i32_0 = arith.constant 0 : i32
    %c0_i32_1 = arith.constant 0 : i32
    return %arg1, %c0_i32, %c0_i32_0 : i32, i32, i32
  }
  func.func @transform_12(%arg0: i32, %arg1: i32) -> (i32, i32, i32) {
    %c0_i32 = arith.constant 0 : i32
    %c0_i32_0 = arith.constant 0 : i32
    %c0_i32_1 = arith.constant 0 : i32
    return %arg1, %c0_i32, %c0_i32_0 : i32, i32, i32
  }
  func.func @transform_13(%arg0: i32, %arg1: i32) -> (i32, i32, i32) {
    %c0_i32 = arith.constant 0 : i32
    %c0_i32_0 = arith.constant 0 : i32
    %c0_i32_1 = arith.constant 0 : i32
    return %arg1, %c0_i32, %c0_i32_0 : i32, i32, i32
  }
  func.func @transform_14(%arg0: i32, %arg1: i32) -> (i32, i32, i32) {
    %c0_i32 = arith.constant 0 : i32
    %c0_i32_0 = arith.constant 0 : i32
    %c0_i32_1 = arith.constant 0 : i32
    return %arg0, %c0_i32, %c0_i32_0 : i32, i32, i32
  }
}

</mosaic_0001>

<bundles_post_ra>
// kernel: transformer_forward.1
= control target key start
LH: loop header
LB: loop body
LE: loop exit
PB: predicated region body
PF: predicated region fallthrough
CT: control target
= control target key end

     0   :  { %s5655_s0 = inlined_call_operand.vmem [shape: f32[2,16,128], index: 0, kind: input, shape index: {}]   ;;  %s5656_s1 = inlined_call_operand.vmem [shape: f32[2,1,128], index: 1, kind: input, shape index: {}]   ;;  %s5657_s2 = inlined_call_operand.vmem [shape: f32[2,1,128], index: 2, kind: input, shape index: {}]   ;;  %s5658_s3 = inlined_call_operand.vmem [shape: bf16[2,4,128,32], index: 3, kind: input, shape index: {}]   ;;  %s5659_s4 = inlined_call_operand.vmem [shape: bf16[2,4,128,32], index: 4, kind: input, shape index: {}]   ;;  %s5660_s5 = inlined_call_operand.vmem [shape: bf16[2,4,128,32], index: 5, kind: input, shape index: {}]   ;;  %s5661_s6 = inlined_call_operand.vmem [shape: bf16[2,4,32,128], index: 6, kind: input, shape index: {}]   ;;  %s5662_s7 = inlined_call_operand.vmem [shape: f32[2,1,128], index: 7, kind: input, shape index: {}]   ;;  %s5663_s8 = inlined_call_operand.vmem [shape: f32[2,1,128], index: 8, kind: input, shape index: {}]   ;;  %s5664_s9 = inlined_call_operand.vmem [shape: f32[2,1,128], index: 9, kind: input, shape index: {}]   ;;  %s5665_s10 = inlined_call_operand.vmem [shape: bf16[2,128,256], index: 10, kind: input, shape index: {}]   ;;  %s5666_s11 = inlined_call_operand.vmem [shape: f32[2,1,256], index: 11, kind: input, shape index: {}]   ;;  %s5667_s12 = inlined_call_operand.vmem [shape: bf16[2,256,128], index: 12, kind: input, shape index: {}]   ;;  %s5668_s13 = inlined_call_operand.vmem [shape: f32[2,1,128], index: 13, kind: input, shape index: {}]   ;;  %s5669_s14 = inlined_call_operand.hbm [shape: f32[2,16,128], index: 14, kind: output, shape index: {}]  }
   0x1   :  { %5685 = sst [smem:[#allocation19_spill]] %s5655_s0 }
   0x2   :  { %5686 = sst [smem:[#allocation20_spill]] %s5657_s2 }
   0x3   :  { %5687 = sst [smem:[#allocation21_spill]] %s5658_s3 }
   0x4   :  { %5688 = sst [smem:[#allocation22_spill]] %s5659_s4 }
   0x5   :  { %5689 = sst [smem:[#allocation23_spill]] %s5660_s5 }
   0x6   :  { %5690 = sst [smem:[#allocation24_spill]] %s5661_s6 }
   0x7   :  { %5691 = sst [smem:[#allocation25_spill]] %s5668_s13 }
   0x8   :  { %5692 = sst [smem:[#allocation26_spill]] %s5669_s14 }
   0x9   :  { %19 = vsyncpa [#allocation4], 0 }
   0xa   :  { %21 = vsyncpa [#allocation4 + $0x1], 0  ;;  %s5040_s29 = smov 0   ;;  %s5042_s30 = smov 0  }
   0xb   :  { %s5044_s15 = smov 0   ;;  %s5046_s16 = smov 0  }
   0xc   :  { %s5048_s17 = smov 0   ;;  %s5050_s18 = smov 0  }
   0xd   :  { %s5052_s19 = smov 0   ;;  %s5054_s20 = smov 0  }
   0xe LB: > { %5693 = sst [smem:[#allocation6_spill]] %s4929_s29  ;;  %s3690_s21 = sadd.s32 4294967295, %s4957_s20   ;;  %s4957_s20 = sphi %s5054_s20, %s27_s20   ;;  %s4953_s19 = sphi %s5052_s19, %s5740_s19   ;;  %s4949_s18 = sphi %s5050_s18, %s5739_s18   ;;  %s4945_s17 = sphi %s5048_s17, %s5738_s17   ;;  %s4941_s16 = sphi %s5046_s16, %s5737_s16   ;;  %s4937_s15 = sphi %s5044_s15, %s5736_s15   ;;  %s4933_s30 = sphi %s5042_s30, %s5735_s30   ;;  %s4929_s29 = sphi %s5040_s29, %s5734_s29  }
   0xf   : > { %5694 = sst [smem:[#allocation7_spill]] %s4933_s30  ;;  %s3691_s22 = sadd.s32 4294967294, %s4957_s20  }
  0x10   : > { %5695 = sst [smem:[#allocation8_spill]] %s4937_s15  ;;  %s36_s23 = sadd.s32 1, %s4949_s18 }
  0x11   : > { %5696 = sst [smem:[#allocation9_spill]] %s4941_s16  ;;  %p37_p0 = scmp.ge.s32.totalorder %s36_s23, 2 }
  0x12   : > { %5697 = sst [smem:[#allocation10_spill]] %s4945_s17  ;;  %s39_s24 = sadd.s32 1, %s4953_s19 }
  0x13   : > { %5698 = sst [smem:[#allocation11_spill]] %s4949_s18  ;;  %p420_p1 = scmp.ne.s32.totalorder %s4937_s15, %s4933_s30 }
  0x14   : > { %5699 = sst [smem:[#allocation12_spill]] %s4953_s19  ;;  %p421_p2 = scmp.eq.s32.totalorder %s3690_s21, 3 }
  0x15   : > { %5700 = sst [smem:[#allocation13_spill]] %s4957_s20  ;;  %s5742_s23 = smov (%p37_p0, %s36_s23), 0 }
  0x16   : > { %5701 = sst [smem:[#allocation14_spill]] %s5742_s23  ;;  %s5744_s24 = smov (!%p37_p0, %s39_s24), %s4953_s19 }
  0x17   : > { %p5089_p3 = por %p421_p2, %p420_p1  ;;  %p426_p4 = scmp.ne.s32.totalorder %s4933_s30, %s4929_s29 }
  0x18   : > { %p41_p5 = scmp.ge.s32.totalorder %s5744_s24, 2  ;;  %p427_p6 = scmp.eq.s32.totalorder %s3691_s22, 3 }
  0x19   : > { %s5702_s25 = scalar_select %p5089_p3, 1, 0 }
  0x1a   : > { %p3694_p7 = scmp.ge.s32.totalorder %s4957_s20, 1  ;;  %p544_p8 = scmp.lt.s32.totalorder %s4957_s20, 5 }
  0x1b   : > { %5703 = sst [smem:[#allocation15_spill]] %s5702_s25  ;;  %s5746_s24 = smov (%p41_p5, %s5744_s24), 0 }
  0x1c   : > { %5704 = sst [smem:[#allocation16_spill]] %s5746_s24  ;;  %p5099_p9 = por %p427_p6, %p426_p4 }
  0x1d   : > { %p545_p10 = pnand %p3694_p7, %p544_p8  ;;  %s407_s27 = ssub.s32 %s4953_s19, %s5746_s24 }
  0x1e   : > { %s5705_s26 = scalar_select %p5099_p9, 1, 0 }
  0x1f   : > { %s410_s28 = sadd.s32 1, %s4937_s15  ;;  %p408_p11 = scmp.eq.s32.totalorder %s407_s27, 0 }
  0x20   : > { %5706 = sst [smem:[#allocation17_spill]] %s5705_s26  ;;  %548 = sbr.rel (%p545_p10) target bundleno = 5123 (0x1403), region = 76 }
  0x21   : > { %s5107_s21 = scalar_select %p408_p11, %s4937_s15, %s410_s28  }
  0x22   : > { %s5674_s22 = sand.u32 (!%p545_p10), 1, %s4933_s30   ;;  %p642_p12 = scmp.lt.s32.totalorder (!%p545_p10), %s4945_s17, 1 }
  0x23   : > { %5707 = sst [smem:[#allocation18_spill]] %s5107_s21  ;;  %s3695_s23 = sshll.u32 (!%p545_p10), %s5674_s22, 4 }
  0x24   : > { %p647_p13 = scmp.lt.s32.totalorder (!%p545_p10), %s4941_s16, 1  ;;  %s5708_s0 = sld [smem:[#allocation19_spill]] (!%p545_p10) }
  0x25   : > { %s5710_s3 = sld [smem:[#allocation21_spill]] (!%p545_p10)  ;;  %s5711_s4 = sld [smem:[#allocation22_spill]] (!%p545_p10) }
  0x26   : > { %s5712_s5 = sld [smem:[#allocation23_spill]] (!%p545_p10)  ;;  %s5713_s6 = sld [smem:[#allocation24_spill]] (!%p545_p10) }
  0x27   : > { %s643_s18 = scalar_select %p642_p12, %s4945_s17, 1 }
  0x28   : > { %s5116_s26 = scalar_select %p647_p13, %s4941_s16, 1 }
  0x29   : > { %s4043_s27 = sshll.u32 %s643_s18, 4  ;;  %s5714_s18 = sld [smem:[#allocation25_spill]] }
  0x2a   : > { %s646_s19 = scalar_lea.vmem %s5708_s0, %s4043_s27  ;;  %s4044_s25 = sshll.u32 %s5116_s26, 8 }
  0x2b   : > { %s5133_s16 = scalar_lea.vmem %s5710_s3, %s4044_s25  ;;  %s5138_s24 = scalar_lea.vmem %s5711_s4, %s4044_s25 }
  0x2c   : > { %s5143_s21 = scalar_lea.vmem %s5712_s5, %s4044_s25  ;;  %s4047_s22 = sshll.u32 %s5116_s26, 6 }
  0x2d   : > { %s5149_s14 = scalar_lea.vmem %s5713_s6, %s4047_s22  ;;  %s4048_s25 = sshll.u32 %s5116_s26, 7 }
  0x2e   : > { %s3708_s28 = sshll.u32 %s5116_s26, 1  ;;  %s5168_s29 = scalar_lea.vmem %s5665_s10, %s4048_s25 }
  0x2f   : > { %s5173_s15 = scalar_lea.vmem %s5666_s11, %s3708_s28  ;;  %s5178_s0 = scalar_lea.vmem %s5667_s12, %s4048_s25 }
  0x30   : > { %s698_s27 = scalar_lea.vmem %s5714_s18, %s5116_s26  ;;  %s5184_s13 = scalar_lea.vmem [#allocation3], %s3695_s23 }
  0x31   : > { %s5715_s6 = sld [smem:[#allocation9_spill]] }
  0x37   : > { %p3711_p0 = scmp.ne.s32.totalorder %s5715_s6, 0 }
  0x38   : > { %v704_v0 = vld [vmem:[%s646_s19] sm:$0xff] (!%p3711_p0)  ;;  %v705_v1 = vld [vmem:[%s646_s19 + $0x8] sm:$0xff] (!%p3711_p0) }
  0x39   : > { %703 = sbr.rel (%p3711_p0) target bundleno = 64 (0x40), region = 80  ;;  %706 = vst [vmem:[#allocation2] sm:$0xff] (!%p3711_p0), %v704_v0  ;;  %707 = vst [vmem:[#allocation2 + $0x8] sm:$0xff] (!%p3711_p0), %v705_v1 }
  0x40 PF: > { %v708_v2 = vld [vmem:[#allocation2] sm:$0xff]  ;;  %v709_v3 = vld [vmem:[#allocation2 + $0x8] sm:$0xff]  ;;  %v4959_v6 = vmov 0.0   ;;  %v4673_v17 = vld [vmem:[%s5133_s16 + $0x10] sm:$0xff]   ;;  %vm4960_vm0 = vmmov 0   ;;  %s5716_s6 = scalar_lea.vmem %s5656_s1, %s5116_s26  ;;  %s5717_s17 = sld [smem:[#allocation20_spill]] }
  0x41   : > { %712 = vadd.xlane.f32.xlu0 %v708_v2  ;;  %v4669_v4 = vld [vmem:[%s5133_s16] sm:$0xff]   ;;  %4225 = vmatprep.subr.bf16.mxu0 %v4959_v6  ;;  %v4671_v7 = vld [vmem:[%s5133_s16 + $0x8] sm:$0xff]   ;;  %v4674_v18 = vld [vmem:[%s5138_s24 + $0x10] sm:$0xff]   ;;  %vm1067_vm1 = vcmask 261120   ;;  %vm1157_vm3 = vcmask 130048   ;;  %s5723_s30 = scalar_lea.vmem %s5664_s9, %s5116_s26  ;;  %s5726_s18 = sld [smem:[#allocation7_spill]] }
  0x42   : > { %v4670_v5 = vld [vmem:[%s5138_s24] sm:$0xff]   ;;  %4245 = vmatprep.subr.bf16.mxu1 %v4959_v6  ;;  %4226 = vmatpush3.bf16.msra.mxu0 %v4669_v4  ;;  %v4672_v16 = vld [vmem:[%s5138_s24 + $0x8] sm:$0xff]   ;;  %v4675_v19 = vld [vmem:[%s5133_s16 + $0x18] sm:$0xff]  }
  0x43   : > { %4246 = vmatpush3.bf16.msra.mxu1 %v4670_v5  ;;  %4227 = vmatprep.subr.bf16.mxu0 %v4959_v6  ;;  %v4676_v20 = vld [vmem:[%s5138_s24 + $0x18] sm:$0xff]   ;;  %v4677_v21 = vld [vmem:[%s5133_s16 + $0x20] sm:$0xff]   ;;  %v4679_v23 = vld [vmem:[%s5133_s16 + $0x28] sm:$0xff]  }
  0x44   : > { %4247 = vmatprep.subr.bf16.mxu1 %v4959_v6  ;;  %v4678_v22 = vld [vmem:[%s5138_s24 + $0x20] sm:$0xff]   ;;  %v4680_v24 = vld [vmem:[%s5138_s24 + $0x28] sm:$0xff]   ;;  %v4681_v25 = vld [vmem:[%s5133_s16 + $0x30] sm:$0xff]   ;;  %4241 = vmatprep.mubr.msk.bf16.mxu0 %vm4960_vm0, %v4959_v6 }
  0x45   : > { %714 = vadd.xlane.f32.xlu0 %v709_v3  ;;  %v4682_v26 = vld [vmem:[%s5138_s24 + $0x30] sm:$0xff]   ;;  %v4683_v27 = vld [vmem:[%s5133_s16 + $0x38] sm:$0xff]   ;;  %4261 = vmatprep.mubr.msk.bf16.mxu1 %vm4960_vm0, %v4959_v6  ;;  %v3712_v37 = vld [vmem:[%s5716_s6] ss:$0 sm:$0xff]  ;;  %s3479_s6 = sshll.u32 %s5184_s13, 4  ;;  %s5596_s6 = int_to_ptr.vmem [resolvable:$true] %s3479_s6 }
  0x46   : > { %4228 = vmatpush3.bf16.msra.mxu0 %v4671_v7  ;;  %v4684_v28 = vld [vmem:[%s5138_s24 + $0x38] sm:$0xff]   ;;  %s5718_s25 = scalar_lea.vmem %s5717_s17, %s5116_s26  ;;  %v4685_v45 = vld [vmem:[%s5143_s21] sm:$0xff]   ;;  %v4686_v47 = vld [vmem:[%s5143_s21 + $0x8] sm:$0xff]   ;;  %s5728_s17 = sld [smem:[#allocation26_spill]] }
  0x47   : > { %4229 = vmatprep.subr.bf16.mxu0 %v4959_v6  ;;  %4248 = vmatpush3.bf16.msra.mxu1 %v4672_v16  ;;  %v3713_v41 = vld [vmem:[%s5718_s25] ss:$0 sm:$0xff]  ;;  %v4687_v48 = vld [vmem:[%s5143_s21 + $0x10] sm:$0xff]   ;;  %v4688_v49 = vld [vmem:[%s5143_s21 + $0x18] sm:$0xff]  }
  0x48   : > { %4249 = vmatprep.subr.bf16.mxu1 %v4959_v6  ;;  %v4689_v50 = vld [vmem:[%s5143_s21 + $0x20] sm:$0xff]   ;;  %v4690_v51 = vld [vmem:[%s5143_s21 + $0x28] sm:$0xff]   ;;  %v4691_v52 = vld [vmem:[%s5143_s21 + $0x30] sm:$0xff]  }
  0x49   : > { %v4692_v53 = vld [vmem:[%s5143_s21 + $0x38] sm:$0xff]   ;;  %v4693_v54 = vld [vmem:[%s5138_s24 + $0x40] sm:$0xff]   ;;  %v4694_v55 = vld [vmem:[%s5138_s24 + $0x48] sm:$0xff]  }
  0x4a   : > { %4230 = vmatpush3.bf16.msra.mxu0 %v4673_v17  ;;  %v4695_v56 = vld [vmem:[%s5138_s24 + $0x50] sm:$0xff]   ;;  %v4696_v57 = vld [vmem:[%s5138_s24 + $0x58] sm:$0xff]   ;;  %v4697_v58 = vld [vmem:[%s5138_s24 + $0x60] sm:$0xff]  }
  0x4b   : > { %4250 = vmatpush3.bf16.msra.mxu1 %v4674_v18  ;;  %4231 = vmatprep.subr.bf16.mxu0 %v4959_v6  ;;  %v4698_v59 = vld [vmem:[%s5138_s24 + $0x68] sm:$0xff]   ;;  %v4699_v60 = vld [vmem:[%s5138_s24 + $0x70] sm:$0xff]   ;;  %v4700_v61 = vld [vmem:[%s5138_s24 + $0x78] sm:$0xff]  }
  0x4c   : > { %4251 = vmatprep.subr.bf16.mxu1 %v4959_v6  ;;  %vm5278_vm2 = vmpackc.low %vm1067_vm1, %vm1067_vm1  ;;  %s5729_s25 = smov %s5728_s17 }
  0x4e   : > { %4232 = vmatpush3.bf16.msra.mxu0 %v4675_v19 }
  0x4f   : > { %4252 = vmatpush3.bf16.msra.mxu1 %v4676_v20  ;;  %4233 = vmatprep.subr.bf16.mxu0 %v4959_v6 }
  0x50   : > { %4253 = vmatprep.subr.bf16.mxu1 %v4959_v6 }
  0x52   : > { %4234 = vmatpush3.bf16.msra.mxu0 %v4677_v21 }
  0x53   : > { %4254 = vmatpush3.bf16.msra.mxu1 %v4678_v22  ;;  %4235 = vmatprep.subr.bf16.mxu0 %v4959_v6 }
  0x54   : > { %4255 = vmatprep.subr.bf16.mxu1 %v4959_v6 }
  0x56   : > { %4236 = vmatpush3.bf16.msra.mxu0 %v4679_v23 }
  0x57   : > { %4256 = vmatpush3.bf16.msra.mxu1 %v4680_v24  ;;  %4237 = vmatprep.subr.bf16.mxu0 %v4959_v6 }
  0x58   : > { %4257 = vmatprep.subr.bf16.mxu1 %v4959_v6 }
  0x5a   : > { %4238 = vmatpush3.bf16.msra.mxu0 %v4681_v25 }
  0x5b   : > { %4258 = vmatpush3.bf16.msra.mxu1 %v4682_v26  ;;  %4239 = vmatprep.subr.bf16.mxu0 %v4959_v6 }
  0x5c   : > { %4259 = vmatprep.subr.bf16.mxu1 %v4959_v6 }
  0x5e   : > { %4240 = vmatpush3.bf16.msra.mxu0 %v4683_v27 }
  0x5f   : > { %4260 = vmatpush3.bf16.msra.mxu1 %v4684_v28  ;;  %4265 = vmatprep.subr.bf16.mxu0 %v4959_v6 }
  0xce   : > { %v713_v8 = vpop.xlane.xlu0 %712 }
  0xcf   : > { %v717_v9 = vmul.f32 0.0078125, %v713_v8 }
  0xd1   : > { %v719_v10 = vsub.f32 %v708_v2, %v717_v9 }
  0xd2   : > { %v715_v11 = vpop.xlane.xlu0 %714 }
  0xd3   : > { %v718_v12 = vmul.f32 0.0078125, %v715_v11  ;;  %v721_v13 = vmul.f32 %v719_v10, %v719_v10 }
  0xd5   : > { %v720_v14 = vsub.f32 %v709_v3, %v718_v12  ;;  %723 = vadd.xlane.f32.xlu1 %v721_v13 }
  0xd7   : > { %v722_v15 = vmul.f32 %v720_v14, %v720_v14 }
  0xd9   : > { %725 = vadd.xlane.f32.xlu1 %v722_v15 }
 0x162   : > { %v724_v29 = vpop.xlane.xlu1 %723 }
 0x163   : > { %v727_v30 = vmul.f32 0.0078125, %v724_v29 }
 0x165   : > { %v729_v31 = vadd.f32 1e-05, %v727_v30 }
 0x166   : > { %v726_v32 = vpop.xlane.xlu1 %725 }
 0x167   : > { %4813 = vrsqrt.f32 %v729_v31  ;;  %v728_v33 = vmul.f32 0.0078125, %v726_v32 }
 0x169   : > { %v730_v34 = vadd.f32 1e-05, %v728_v33 }
 0x16b   : > { %4815 = vrsqrt.f32 %v730_v34 }
 0x171   : > { %v4814_v35 = vpop.eup %4813 }
 0x172   : > { %v733_v36 = vmul.f32 %v4814_v35, %v719_v10 }
 0x174   : > { %v741_v39 = vmul.f32 %v3712_v37, %v733_v36 }
 0x175   : > { %v4816_v38 = vpop.eup %4815 }
 0x176   : > { %v734_v40 = vmul.f32 %v4816_v38, %v720_v14  ;;  %v749_v43 = vadd.f32 %v3713_v41, %v741_v39 }
 0x178   : > { %v742_v42 = vmul.f32 %v3712_v37, %v734_v40  ;;  %v4701_v40 = vld [vmem:[%s5133_s16 + $0x40] sm:$0xff]  }
 0x17a   : > { %v750_v44 = vadd.f32 %v3713_v41, %v742_v42  ;;  %v4702_v42 = vld [vmem:[%s5133_s16 + $0x48] sm:$0xff]  }
 0x17c   : > { %v5235_v46 = vpack.c.bf16 %v750_v44, %v749_v43  ;;  %v4703_v43 = vld [vmem:[%s5133_s16 + $0x50] sm:$0xff]   ;;  %v4704_v44 = vld [vmem:[%s5133_s16 + $0x58] sm:$0xff]  }
 0x17e   : > { %4242 = vmatmul.mubr.bf16.vlgmr.msra.gmra.mrb[0].mxu0 %v5235_v46  ;;  %4262 = vmatmul.mubr.bf16.vlgmr.msra.gmra.mrb[0].mxu1 %v5235_v46 }
 0x17f   : > { %4266 = vmatpush3.bf16.msra.mxu0 %v4685_v45  ;;  %4281 = vmatprep.mubr.msk.bf16.mxu0 %vm4960_vm0, %v4959_v6  ;;  %v4705_v45 = vld [vmem:[%s5133_s16 + $0x60] sm:$0xff]  }
 0x180   : > { %4267 = vmatprep.subr.bf16.mxu0 %v4959_v6 }
 0x183   : > { %4268 = vmatpush3.bf16.msra.mxu0 %v4686_v47  ;;  %v4706_v47 = vld [vmem:[%s5133_s16 + $0x68] sm:$0xff]  }
 0x184   : > { %4269 = vmatprep.subr.bf16.mxu0 %v4959_v6 }
 0x187   : > { %4270 = vmatpush3.bf16.msra.mxu0 %v4687_v48  ;;  %v4707_v48 = vld [vmem:[%s5133_s16 + $0x70] sm:$0xff]  }
 0x188   : > { %4271 = vmatprep.subr.bf16.mxu0 %v4959_v6 }
 0x18b   : > { %4272 = vmatpush3.bf16.msra.mxu0 %v4688_v49  ;;  %v4708_v49 = vld [vmem:[%s5133_s16 + $0x78] sm:$0xff]  }
 0x18c   : > { %4273 = vmatprep.subr.bf16.mxu0 %v4959_v6 }
 0x18f   : > { %4274 = vmatpush3.bf16.msra.mxu0 %v4689_v50  ;;  %v4709_v50 = vld [vmem:[%s5143_s21 + $0x40] sm:$0xff]  }
 0x190   : > { %4275 = vmatprep.subr.bf16.mxu0 %v4959_v6 }
 0x193   : > { %4276 = vmatpush3.bf16.msra.mxu0 %v4690_v51  ;;  %v4710_v51 = vld [vmem:[%s5143_s21 + $0x48] sm:$0xff]  }
 0x194   : > { %4277 = vmatprep.subr.bf16.mxu0 %v4959_v6 }
 0x197   : > { %4278 = vmatpush3.bf16.msra.mxu0 %v4691_v52  ;;  %v4711_v52 = vld [vmem:[%s5143_s21 + $0x50] sm:$0xff]  }
 0x198   : > { %4279 = vmatprep.subr.bf16.mxu0 %v4959_v6 }
 0x19b   : > { %4280 = vmatpush3.bf16.msra.mxu0 %v4692_v53  ;;  %v4712_v53 = vld [vmem:[%s5143_s21 + $0x58] sm:$0xff]  }
 0x19c   : > { %4319 = vmatprep.subr.bf16.mxu0 %v4959_v6 }
 0x19e   : > { %4282 = vmatmul.mubr.bf16.vlgmr.msra.gmra.mrb[4].mxu0 %v5235_v46 }
 0x19f   : > { %4320 = vmatpush3.bf16.msra.mxu0 %v4693_v54  ;;  %4335 = vmatprep.mubr.msk.bf16.mxu0 %vm4960_vm0, %v4959_v6  ;;  %v4713_v54 = vld [vmem:[%s5143_s21 + $0x60] sm:$0xff]  }
 0x1a0   : > { %4321 = vmatprep.subr.bf16.mxu0 %v4959_v6 }
 0x1a3   : > { %4322 = vmatpush3.bf16.msra.mxu0 %v4694_v55  ;;  %v4714_v55 = vld [vmem:[%s5143_s21 + $0x68] sm:$0xff]  }
 0x1a4   : > { %4323 = vmatprep.subr.bf16.mxu0 %v4959_v6 }
 0x1a7   : > { %4324 = vmatpush3.bf16.msra.mxu0 %v4695_v56  ;;  %v4715_v56 = vld [vmem:[%s5143_s21 + $0x70] sm:$0xff]  }
 0x1a8   : > { %4325 = vmatprep.subr.bf16.mxu0 %v4959_v6 }
 0x1ab   : > { %4326 = vmatpush3.bf16.msra.mxu0 %v4696_v57  ;;  %v4716_v57 = vld [vmem:[%s5143_s21 + $0x78] sm:$0xff]  }
 0x1ac   : > { %4327 = vmatprep.subr.bf16.mxu0 %v4959_v6 }
 0x1af   : > { %4328 = vmatpush3.bf16.msra.mxu0 %v4697_v58  ;;  %v4717_v58 = vld [vmem:[%s5149_s14] sm:$0xff]  }
 0x1b0   : > { %4329 = vmatprep.subr.bf16.mxu0 %v4959_v6 }
 0x1b3   : > { %4330 = vmatpush3.bf16.msra.mxu0 %v4698_v59  ;;  %v4718_v59 = vld [vmem:[%s5149_s14 + $0x8] sm:$0xff]  }
 0x1b4   : > { %4331 = vmatprep.subr.bf16.mxu0 %v4959_v6 }
 0x1b7   : > { %4332 = vmatpush3.bf16.msra.mxu0 %v4699_v60 }
 0x1b8   : > { %4333 = vmatprep.subr.bf16.mxu0 %v4959_v6 }
 0x1bb   : > { %4334 = vmatpush3.bf16.msra.mxu0 %v4700_v61 }
 0x1be   : > { %4336 = vmatmul.mubr.bf16.vlgmr.msra.gmra.mrb[8].mxu0 %v5235_v46 }
 0x251   : > { %v850_v62 = vpop.f32.mrb[0].mxu0  ;;  %v955_v63 = vpop.f32.mrb[0].mxu1 }
 0x252   : > { %v4243_v0 = vpop.f32.mrb[1].mxu0  ;;  %v4263_v1 = vpop.f32.mrb[1].mxu1  ;;  %4289 = vmatprep.mubr.msk.f32.mxu1 %vm1067_vm1, %v850_v62  ;;  %v4719_v62 = vld [vmem:[%s5138_s24 + $0x80] sm:$0xff]  }
 0x253   : > { %v853_v2 = vpop.f32.mrb[2].mxu0  ;;  %v958_v3 = vpop.f32.mrb[2].mxu1  ;;  %v4720_v0 = vld [vmem:[%s5138_s24 + $0x88] sm:$0xff]   ;;  %v4721_v1 = vld [vmem:[%s5138_s24 + $0x90] sm:$0xff]  }
 0x254   : > { %v4553_v5 = vpack.c.bf16 %v958_v3, %v955_v63  ;;  %v4244_v7 = vpop.f32.mrb[3].mxu0  ;;  %v4264_v8 = vpop.f32.mrb[3].mxu1  ;;  %v4723_v3 = vld [vmem:[%s5138_s24 + $0xa0] sm:$0xff]  }
 0x255   : > { %v4725_v7 = vld [vmem:[%s5138_s24 + $0xb0] sm:$0xff]   ;;  %v4726_v8 = vld [vmem:[%s5138_s24 + $0xb8] sm:$0xff]  }
 0x256   : > { %4555 = vmatprep.subr.msk.bf16.mxu1 %vm5278_vm2, %v4553_v5 }
 0x257   : > { %4558 = vmatpush3.bf16.xpose.msk.msra.mxu1 %vm5278_vm2, %v4553_v5  ;;  %v4724_v5 = vld [vmem:[%s5138_s24 + $0xa8] sm:$0xff]  }
 0x25e   : > { %4290 = vmatmul.mubr.msk.f32.vlgmr.msra.gmra.mrb[4].mxu1 %vm1067_vm1, %v853_v2  ;;  %v4722_v2 = vld [vmem:[%s5138_s24 + $0x98] sm:$0xff]  }
 0x271   : > { %v1060_v9 = vpop.f32.mrb[4].mxu0 }
 0x272   : > { %v4283_v10 = vpop.f32.mrb[5].mxu0 }
 0x273   : > { %v1063_v11 = vpop.f32.mrb[6].mxu0 }
 0x274   : > { %v4559_v12 = vpack.c.bf16 %v1063_v11, %v1060_v9  ;;  %v4284_v13 = vpop.f32.mrb[7].mxu0 }
 0x276   : > { %4560 = vmatprep.subr.bf16.mxu1 %v4559_v12 }
 0x277   : > { %4562 = vmatpush3.bf16.msra.mxu1 %v4559_v12 }
 0x278   : > { %4299 = vmatprep.subr.bf16.mxu1 %v4959_v6 }
 0x291   : > { %v1471_v14 = vpop.f32.mrb[8].mxu0 }
 0x292   : > { %v4337_v15 = vpop.f32.mrb[9].mxu0 }
 0x293   : > { %v1474_v16 = vpop.f32.mrb[10].mxu0 }
 0x294   : > { %v4563_v17 = vpack.c.bf16 %v1474_v16, %v1471_v14  ;;  %v4338_v18 = vpop.f32.mrb[11].mxu0 }
 0x296   : > { %4565 = vmatprep.subr.msk.bf16.mxu0 %vm5278_vm2, %v4563_v17 }
 0x297   : > { %4568 = vmatpush3.bf16.xpose.msk.msra.mxu0 %vm5278_vm2, %v4563_v17 }
 0x331   : > { %v4291_v19 = vpop.f32.mrb[4].mxu1 }
 0x332   : > { %v1156_v20 = vmul.f32 0.17677669, %v4291_v19  ;;  %v1146_v21 = vpop.f32.mrb[5].mxu1 }
 0x333   : > { %v1155_v22 = vmul.f32 0.17677669, %v1146_v21 }
 0x334   : > { %v1161_v23 = vsel %vm1157_vm3, %v1156_v20, -inf }
 0x335   : > { %1162 = vmax.xlane.f32.xlu1 %v1161_v23  ;;  %v1158_v24 = vsel %vm1157_vm3, %v1155_v22, -inf }
 0x336   : > { %1159 = vmax.xlane.f32.xlu0 %v1158_v24 }
 0x3c2   : > { %v1163_v25 = vpop.xlane.xlu1 %1162 }
 0x3c3   : > { %v1165_v26 = vsub.f32 %v1156_v20, %v1163_v25  ;;  %v1160_v27 = vpop.xlane.xlu0 %1159 }
 0x3c4   : > { %v1164_v28 = vsub.f32 %v1155_v22, %v1160_v27 }
 0x3c5   : > { %v1168_v29 = vmul.f32 1.442695, %v1165_v26 }
 0x3c6   : > { %v1166_v30 = vmul.f32 1.442695, %v1164_v28 }
 0x3c7   : > { %4817 = vpow2.f32 %v1168_v29 }
 0x3c8   : > { %4819 = vpow2.f32 %v1166_v30 }
 0x3d1   : > { %v4818_v31 = vpop.eup %4817 }
 0x3d2   : > { %v4820_v32 = vpop.eup %4819  ;;  %v1173_v33 = vsel %vm1157_vm3, %v4818_v31, 0.0 }
 0x3d3   : > { %1174 = vadd.xlane.f32.xlu1 %v1173_v33  ;;  %v1170_v34 = vsel %vm1157_vm3, %v4820_v32, 0.0 }
 0x3d4   : > { %1171 = vadd.xlane.f32.xlu0 %v1170_v34 }
 0x460   : > { %v1175_v35 = vpop.xlane.xlu1 %1174 }
 0x461   : > { %4821 = vrcp.f32 %v1175_v35  ;;  %v1172_v36 = vpop.xlane.xlu0 %1171 }
 0x462   : > { %4823 = vrcp.f32 %v1172_v36 }
 0x46b   : > { %v4822_v37 = vpop.eup %4821 }
 0x46c   : > { %v4824_v38 = vpop.eup %4823  ;;  %v1179_v41 = vmul.f32 %v4822_v37, %v4818_v31 }
 0x46d   : > { %v1178_v39 = vmul.f32 %v4824_v38, %v4820_v32 }
 0x46f   : > { %4296 = vmatprep.mubr.msk.f32.mxu1 %vm1157_vm3, %v1178_v39 }
 0x470   : > { %4297 = vmatmul.mubr.msk.f32.vlgmr.msra.gmra.mrb[6].mxu1 %vm1157_vm3, %v1179_v41 }
 0x471   : > { %4300 = vmatpush3.bf16.msra.mxu1 %v4701_v40  ;;  %4315 = vmatprep.mubr.msk.bf16.mxu1 %vm4960_vm0, %v4959_v6 }
 0x472   : > { %4301 = vmatprep.subr.bf16.mxu1 %v4959_v6 }
 0x475   : > { %4302 = vmatpush3.bf16.msra.mxu1 %v4702_v42 }
 0x476   : > { %4303 = vmatprep.subr.bf16.mxu1 %v4959_v6 }
 0x479   : > { %4304 = vmatpush3.bf16.msra.mxu1 %v4703_v43 }
 0x47a   : > { %4305 = vmatprep.subr.bf16.mxu1 %v4959_v6 }
 0x47d   : > { %4306 = vmatpush3.bf16.msra.mxu1 %v4704_v44 }
 0x47e   : > { %4307 = vmatprep.subr.bf16.mxu1 %v4959_v6 }
 0x481   : > { %4308 = vmatpush3.bf16.msra.mxu1 %v4705_v45 }
 0x482   : > { %4309 = vmatprep.subr.bf16.mxu1 %v4959_v6 }
 0x485   : > { %4310 = vmatpush3.bf16.msra.mxu1 %v4706_v47 }
 0x486   : > { %4311 = vmatprep.subr.bf16.mxu1 %v4959_v6 }
 0x489   : > { %4312 = vmatpush3.bf16.msra.mxu1 %v4707_v48 }
 0x48a   : > { %4313 = vmatprep.subr.bf16.mxu1 %v4959_v6 }
 0x48d   : > { %4314 = vmatpush3.bf16.msra.mxu1 %v4708_v49  ;;  %v4727_v49 = vld [vmem:[%s5149_s14 + $0x10] sm:$0xff]  }
 0x48e   : > { %4339 = vmatprep.subr.bf16.mxu1 %v4959_v6 }
 0x490   : > { %4316 = vmatmul.mubr.bf16.vlgmr.msra.gmra.mrb[8].mxu1 %v5235_v46 }
 0x491   : > { %4340 = vmatpush3.bf16.msra.mxu1 %v4709_v50  ;;  %4355 = vmatprep.mubr.msk.bf16.mxu1 %vm4960_vm0, %v4959_v6 }
 0x492   : > { %4341 = vmatprep.subr.bf16.mxu1 %v4959_v6 }
 0x495   : > { %4342 = vmatpush3.bf16.msra.mxu1 %v4710_v51  ;;  %v4728_v51 = vld [vmem:[%s5149_s14 + $0x18] sm:$0xff]  }
 0x496   : > { %4343 = vmatprep.subr.bf16.mxu1 %v4959_v6 }
 0x499   : > { %4344 = vmatpush3.bf16.msra.mxu1 %v4711_v52 }
 0x49a   : > { %4345 = vmatprep.subr.bf16.mxu1 %v4959_v6 }
 0x49d   : > { %4346 = vmatpush3.bf16.msra.mxu1 %v4712_v53 }
 0x49e   : > { %4347 = vmatprep.subr.bf16.mxu1 %v4959_v6 }
 0x4a1   : > { %4348 = vmatpush3.bf16.msra.mxu1 %v4713_v54  ;;  %v4729_v54 = vld [vmem:[%s5133_s16 + $0x80] sm:$0xff]  }
 0x4a2   : > { %4349 = vmatprep.subr.bf16.mxu1 %v4959_v6 }
 0x4a5   : > { %4350 = vmatpush3.bf16.msra.mxu1 %v4714_v55 }
 0x4a6   : > { %4351 = vmatprep.subr.bf16.mxu1 %v4959_v6 }
 0x4a9   : > { %4352 = vmatpush3.bf16.msra.mxu1 %v4715_v56  ;;  %v4730_v56 = vld [vmem:[%s5133_s16 + $0x88] sm:$0xff]  }
 0x4aa   : > { %4353 = vmatprep.subr.bf16.mxu1 %v4959_v6 }
 0x4ad   : > { %4354 = vmatpush3.bf16.msra.mxu1 %v4716_v57  ;;  %v4731_v57 = vld [vmem:[%s5133_s16 + $0x90] sm:$0xff]  }
 0x4ae   : > { %4381 = vmatprep.subr.bf16.mxu1 %v4959_v6 }
 0x4b0   : > { %4356 = vmatmul.mubr.bf16.vlgmr.msra.gmra.mrb[12].mxu1 %v5235_v46 }
 0x4b1   : > { %4382 = vmatpush3.bf16.msra.mxu1 %v4717_v58  ;;  %4385 = vmatprep.mubr.msk.bf16.mxu1 %vm4960_vm0, %v4959_v6  ;;  %v4732_v58 = vld [vmem:[%s5133_s16 + $0x98] sm:$0xff]  }
 0x4b2   : > { %4383 = vmatprep.subr.bf16.mxu1 %v4959_v6 }
 0x4b5   : > { %4384 = vmatpush3.bf16.msra.mxu1 %v4718_v59  ;;  %v4733_v59 = vld [vmem:[%s5133_s16 + $0xa0] sm:$0xff]  }
 0x4b6   : > { %4409 = vmatprep.subr.bf16.mxu1 %v4959_v6 }
 0x543   : > { %v4298_v60 = vpop.f32.mrb[6].mxu1 }
 0x544   : > { %v1252_v61 = vpop.f32.mrb[7].mxu1 }
 0x545   : > { %v1261_v63 = vpack.c.bf16 %v4298_v60, %v1252_v61  ;;  %v4734_v60 = vld [vmem:[%s5133_s16 + $0xa8] sm:$0xff]   ;;  %v4735_v61 = vld [vmem:[%s5133_s16 + $0xb0] sm:$0xff]  }
 0x547   : > { %4386 = vmatmul.mubr.msk.bf16.vlgmr.msra.gmra.mrb[16].mxu1 %vm1067_vm1, %v1261_v63  ;;  %v4737_v63 = vld [vmem:[%s5143_s21 + $0x80] sm:$0xff]  }
 0x548   : > { %4410 = vmatpush3.bf16.msra.mxu1 %v4719_v62  ;;  %4425 = vmatprep.mubr.msk.bf16.mxu1 %vm4960_vm0, %v4959_v6  ;;  %v4736_v62 = vld [vmem:[%s5133_s16 + $0xb8] sm:$0xff]  }
 0x549   : > { %4411 = vmatprep.subr.bf16.mxu1 %v4959_v6 }
 0x54c   : > { %4412 = vmatpush3.bf16.msra.mxu1 %v4720_v0  ;;  %v4738_v0 = vld [vmem:[%s5143_s21 + $0x88] sm:$0xff]  }
 0x54d   : > { %4413 = vmatprep.subr.bf16.mxu1 %v4959_v6 }
 0x550   : > { %4414 = vmatpush3.bf16.msra.mxu1 %v4721_v1  ;;  %v4739_v1 = vld [vmem:[%s5143_s21 + $0x90] sm:$0xff]  }
 0x551   : > { %4415 = vmatprep.subr.bf16.mxu1 %v4959_v6 }
 0x554   : > { %4416 = vmatpush3.bf16.msra.mxu1 %v4722_v2  ;;  %v4740_v2 = vld [vmem:[%s5143_s21 + $0x98] sm:$0xff]  }
 0x555   : > { %4417 = vmatprep.subr.bf16.mxu1 %v4959_v6 }
 0x558   : > { %4418 = vmatpush3.bf16.msra.mxu1 %v4723_v3  ;;  %v4741_v3 = vld [vmem:[%s5143_s21 + $0xa0] sm:$0xff]  }
 0x559   : > { %4419 = vmatprep.subr.bf16.mxu1 %v4959_v6 }
 0x55c   : > { %4420 = vmatpush3.bf16.msra.mxu1 %v4724_v5  ;;  %v4742_v5 = vld [vmem:[%s5143_s21 + $0xa8] sm:$0xff]  }
 0x55d   : > { %4421 = vmatprep.subr.bf16.mxu1 %v4959_v6 }
 0x560   : > { %4422 = vmatpush3.bf16.msra.mxu1 %v4725_v7  ;;  %v4743_v7 = vld [vmem:[%s5143_s21 + $0xb0] sm:$0xff]  }
 0x561   : > { %4423 = vmatprep.subr.bf16.mxu1 %v4959_v6 }
 0x563   : > { %v1365_v9 = vpop.f32.mrb[8].mxu1 }
 0x564   : > { %v4317_v10 = vpop.f32.mrb[9].mxu1  ;;  %4363 = vmatprep.mubr.msk.f32.mxu0 %vm1067_vm1, %v1365_v9  ;;  %4424 = vmatpush3.bf16.msra.mxu1 %v4726_v8  ;;  %v4744_v8 = vld [vmem:[%s5143_s21 + $0xb8] sm:$0xff]   ;;  %v4745_v9 = vld [vmem:[%s5138_s24 + $0xc0] sm:$0xff]  }
 0x565   : > { %v1368_v11 = vpop.f32.mrb[10].mxu1  ;;  %v4746_v10 = vld [vmem:[%s5138_s24 + $0xc8] sm:$0xff]  }
 0x566   : > { %v4318_v12 = vpop.f32.mrb[11].mxu1  ;;  %4364 = vmatmul.mubr.msk.f32.vlgmr.msra.gmra.mrb[12].mxu0 %vm1067_vm1, %v1368_v11  ;;  %v4747_v11 = vld [vmem:[%s5138_s24 + $0xd0] sm:$0xff]  }
 0x567   : > { %4426 = vmatmul.mubr.bf16.vlgmr.msra.gmra.mrb[20].mxu1 %v5235_v46  ;;  %v4748_v12 = vld [vmem:[%s5138_s24 + $0xd8] sm:$0xff]  }
 0x583   : > { %v1577_v13 = vpop.f32.mrb[12].mxu1 }
 0x584   : > { %v4357_v14 = vpop.f32.mrb[13].mxu1 }
 0x585   : > { %v1580_v15 = vpop.f32.mrb[14].mxu1  ;;  %v4750_v14 = vld [vmem:[%s5138_s24 + $0xe8] sm:$0xff]  }
 0x586   : > { %v4569_v16 = vpack.c.bf16 %v1580_v15, %v1577_v13  ;;  %v4358_v17 = vpop.f32.mrb[15].mxu1  ;;  %v4749_v13 = vld [vmem:[%s5138_s24 + $0xe0] sm:$0xff]   ;;  %v4751_v15 = vld [vmem:[%s5138_s24 + $0xf0] sm:$0xff]  }
 0x588   : > { %4570 = vmatprep.subr.bf16.mxu0 %v4569_v16 }
 0x589   : > { %4572 = vmatpush3.bf16.msra.mxu0 %v4569_v16  ;;  %v4752_v16 = vld [vmem:[%s5138_s24 + $0xf8] sm:$0xff]   ;;  %s4863_s24 = scalar_lea.vmem %s5596_s6, 256 }
 0x58a   : > { %4373 = vmatprep.subr.bf16.mxu0 %v4959_v6  ;;  %p4864_p1 = scmp.ne.s32.totalorder %s5596_s6, %s4863_s24 }
 0x58c   : > { %p4865_p2 = pnand %p4864_p1, %p5089_p3 }
 0x58e   : > { %p4866_p4 = pneg %p4865_p2 }
 0x61a   : > { %v5364_v18 = vpop.f32.mrb[16].mxu1 }
 0x61b   : > { %v4387_v19 = vpop.f32.mrb[17].mxu1 }
 0x61c   : > { %v5366_v20 = vpop.f32.mrb[18].mxu1 }
 0x61d   : > { %v4388_v21 = vpop.f32.mrb[19].mxu1 }
 0x639   : > { %v4365_v22 = vpop.f32.mrb[12].mxu0 }
 0x63a   : > { %v1672_v23 = vmul.f32 0.17677669, %v4365_v22  ;;  %v1662_v24 = vpop.f32.mrb[13].mxu0  ;;  %v2099_v25 = vpop.f32.mrb[20].mxu1 }
 0x63b   : > { %v1671_v26 = vmul.f32 0.17677669, %v1662_v24  ;;  %v4427_v27 = vpop.f32.mrb[21].mxu1 }
 0x63c   : > { %v2102_v28 = vpop.f32.mrb[22].mxu1  ;;  %v1676_v29 = vsel %vm1157_vm3, %v1672_v23, -inf }
 0x63d   : > { %v4573_v30 = vpack.c.bf16 %v2102_v28, %v2099_v25  ;;  %v4428_v31 = vpop.f32.mrb[23].mxu1  ;;  %1677 = vmax.xlane.f32.xlu1 %v1676_v29  ;;  %v1673_v32 = vsel %vm1157_vm3, %v1671_v26, -inf }
 0x63e   : > { %1674 = vmax.xlane.f32.xlu0 %v1673_v32 }
 0x63f   : > { %4575 = vmatprep.subr.msk.bf16.mxu1 %vm5278_vm2, %v4573_v30 }
 0x640   : > { %4578 = vmatpush3.bf16.xpose.msk.msra.mxu1 %vm5278_vm2, %v4573_v30 }
 0x6ca   : > { %v1678_v33 = vpop.xlane.xlu1 %1677 }
 0x6cb   : > { %v1680_v34 = vsub.f32 %v1672_v23, %v1678_v33  ;;  %v1675_v35 = vpop.xlane.xlu0 %1674 }
 0x6cc   : > { %v1679_v36 = vsub.f32 %v1671_v26, %v1675_v35 }
 0x6cd   : > { %v1683_v37 = vmul.f32 1.442695, %v1680_v34 }
 0x6ce   : > { %v1681_v38 = vmul.f32 1.442695, %v1679_v36 }
 0x6cf   : > { %4825 = vpow2.f32 %v1683_v37 }
 0x6d0   : > { %4827 = vpow2.f32 %v1681_v38 }
 0x6d9   : > { %v4826_v39 = vpop.eup %4825 }
 0x6da   : > { %v4828_v40 = vpop.eup %4827  ;;  %v1688_v41 = vsel %vm1157_vm3, %v4826_v39, 0.0 }
 0x6db   : > { %1689 = vadd.xlane.f32.xlu1 %v1688_v41  ;;  %v1685_v42 = vsel %vm1157_vm3, %v4828_v40, 0.0 }
 0x6dc   : > { %1686 = vadd.xlane.f32.xlu0 %v1685_v42 }
 0x768   : > { %v1690_v43 = vpop.xlane.xlu1 %1689 }
 0x769   : > { %4829 = vrcp.f32 %v1690_v43  ;;  %v1687_v44 = vpop.xlane.xlu0 %1686 }
 0x76a   : > { %4831 = vrcp.f32 %v1687_v44 }
 0x773   : > { %v4830_v45 = vpop.eup %4829 }
 0x774   : > { %v4832_v47 = vpop.eup %4831  ;;  %v1694_v50 = vmul.f32 %v4830_v45, %v4826_v39 }
 0x775   : > { %v1693_v48 = vmul.f32 %v4832_v47, %v4828_v40 }
 0x777   : > { %4370 = vmatprep.mubr.msk.f32.mxu0 %vm1157_vm3, %v1693_v48 }
 0x778   : > { %4371 = vmatmul.mubr.msk.f32.vlgmr.msra.gmra.mrb[14].mxu0 %vm1157_vm3, %v1694_v50 }
 0x779   : > { %4374 = vmatpush3.bf16.msra.mxu0 %v4727_v49  ;;  %4377 = vmatprep.mubr.msk.bf16.mxu0 %vm4960_vm0, %v4959_v6 }
 0x77a   : > { %4375 = vmatprep.subr.bf16.mxu0 %v4959_v6 }
 0x77d   : > { %4376 = vmatpush3.bf16.msra.mxu0 %v4728_v51 }
 0x77e   : > { %4389 = vmatprep.subr.bf16.mxu0 %v4959_v6 }
 0x84b   : > { %v4372_v52 = vpop.f32.mrb[14].mxu0 }
 0x84c   : > { %v1767_v53 = vpop.f32.mrb[15].mxu0 }
 0x84d   : > { %v1776_v55 = vpack.c.bf16 %v4372_v52, %v1767_v53 }
 0x84f   : > { %4378 = vmatmul.mubr.msk.bf16.vlgmr.msra.gmra.mrb[16].mxu0 %vm1067_vm1, %v1776_v55 }
 0x850   : > { %4390 = vmatpush3.bf16.msra.mxu0 %v4729_v54  ;;  %4405 = vmatprep.mubr.msk.bf16.mxu0 %vm4960_vm0, %v4959_v6 }
 0x851   : > { %4391 = vmatprep.subr.bf16.mxu0 %v4959_v6 }
 0x854   : > { %4392 = vmatpush3.bf16.msra.mxu0 %v4730_v56 }
 0x855   : > { %4393 = vmatprep.subr.bf16.mxu0 %v4959_v6 }
 0x858   : > { %4394 = vmatpush3.bf16.msra.mxu0 %v4731_v57 }
 0x859   : > { %4395 = vmatprep.subr.bf16.mxu0 %v4959_v6 }
 0x85c   : > { %4396 = vmatpush3.bf16.msra.mxu0 %v4732_v58  ;;  %v4753_v58 = vld [vmem:[%s5149_s14 + $0x20] sm:$0xff]  }
 0x85d   : > { %4397 = vmatprep.subr.bf16.mxu0 %v4959_v6 }
 0x860   : > { %4398 = vmatpush3.bf16.msra.mxu0 %v4733_v59 }
 0x861   : > { %4399 = vmatprep.subr.bf16.mxu0 %v4959_v6 }
 0x864   : > { %4400 = vmatpush3.bf16.msra.mxu0 %v4734_v60  ;;  %v4754_v60 = vld [vmem:[%s5149_s14 + $0x28] sm:$0xff]  }
 0x865   : > { %4401 = vmatprep.subr.bf16.mxu0 %v4959_v6 }
 0x868   : > { %4402 = vmatpush3.bf16.msra.mxu0 %v4735_v61 }
 0x869   : > { %4403 = vmatprep.subr.bf16.mxu0 %v4959_v6 }
 0x86c   : > { %4404 = vmatpush3.bf16.msra.mxu0 %v4736_v62 }
 0x86d   : > { %4429 = vmatprep.subr.bf16.mxu0 %v4959_v6 }
 0x86f   : > { %4406 = vmatmul.mubr.bf16.vlgmr.msra.gmra.mrb[20].mxu0 %v5235_v46 }
 0x870   : > { %4430 = vmatpush3.bf16.msra.mxu0 %v4737_v63  ;;  %4445 = vmatprep.mubr.msk.bf16.mxu0 %vm4960_vm0, %v4959_v6  ;;  %v4755_v63 = vld [vmem:[%s5133_s16 + $0xc0] sm:$0xff]  }
 0x871   : > { %4431 = vmatprep.subr.bf16.mxu0 %v4959_v6 }
 0x874   : > { %4432 = vmatpush3.bf16.msra.mxu0 %v4738_v0 }
 0x875   : > { %4433 = vmatprep.subr.bf16.mxu0 %v4959_v6 }
 0x878   : > { %4434 = vmatpush3.bf16.msra.mxu0 %v4739_v1  ;;  %v4756_v1 = vld [vmem:[%s5133_s16 + $0xc8] sm:$0xff]  }
 0x879   : > { %4435 = vmatprep.subr.bf16.mxu0 %v4959_v6 }
 0x87c   : > { %4436 = vmatpush3.bf16.msra.mxu0 %v4740_v2  ;;  %v4757_v2 = vld [vmem:[%s5133_s16 + $0xd0] sm:$0xff]  }
 0x87d   : > { %4437 = vmatprep.subr.bf16.mxu0 %v4959_v6 }
 0x880   : > { %4438 = vmatpush3.bf16.msra.mxu0 %v4741_v3  ;;  %v4758_v3 = vld [vmem:[%s5133_s16 + $0xd8] sm:$0xff]  }
 0x881   : > { %4439 = vmatprep.subr.bf16.mxu0 %v4959_v6 }
 0x884   : > { %4440 = vmatpush3.bf16.msra.mxu0 %v4742_v5  ;;  %v4759_v5 = vld [vmem:[%s5133_s16 + $0xe0] sm:$0xff]  }
 0x885   : > { %4441 = vmatprep.subr.bf16.mxu0 %v4959_v6 }
 0x888   : > { %4442 = vmatpush3.bf16.msra.mxu0 %v4743_v7  ;;  %v4760_v7 = vld [vmem:[%s5133_s16 + $0xe8] sm:$0xff]  }
 0x889   : > { %4443 = vmatprep.subr.bf16.mxu0 %v4959_v6 }
 0x88c   : > { %4444 = vmatpush3.bf16.msra.mxu0 %v4744_v8  ;;  %v4761_v8 = vld [vmem:[%s5133_s16 + $0xf0] sm:$0xff]  }
 0x88d   : > { %4491 = vmatprep.subr.bf16.mxu0 %v4959_v6 }
 0x88f   : > { %4446 = vmatmul.mubr.bf16.vlgmr.msra.gmra.mrb[24].mxu0 %v5235_v46 }
 0x890   : > { %4492 = vmatpush3.bf16.msra.mxu0 %v4745_v9  ;;  %4507 = vmatprep.mubr.msk.bf16.mxu0 %vm4960_vm0, %v4959_v6  ;;  %v4762_v9 = vld [vmem:[%s5133_s16 + $0xf8] sm:$0xff]  }
 0x891   : > { %4493 = vmatprep.subr.bf16.mxu0 %v4959_v6 }
 0x894   : > { %4494 = vmatpush3.bf16.msra.mxu0 %v4746_v10  ;;  %v4763_v10 = vld [vmem:[%s5143_s21 + $0xc0] sm:$0xff]  }
 0x895   : > { %4495 = vmatprep.subr.bf16.mxu0 %v4959_v6 }
 0x898   : > { %4496 = vmatpush3.bf16.msra.mxu0 %v4747_v11  ;;  %v4764_v11 = vld [vmem:[%s5143_s21 + $0xc8] sm:$0xff]  }
 0x899   : > { %4497 = vmatprep.subr.bf16.mxu0 %v4959_v6 }
 0x89c   : > { %4498 = vmatpush3.bf16.msra.mxu0 %v4748_v12  ;;  %v4765_v12 = vld [vmem:[%s5143_s21 + $0xd0] sm:$0xff]  }
 0x89d   : > { %4499 = vmatprep.subr.bf16.mxu0 %v4959_v6 }
 0x8a0   : > { %4500 = vmatpush3.bf16.msra.mxu0 %v4749_v13  ;;  %v4766_v13 = vld [vmem:[%s5143_s21 + $0xd8] sm:$0xff]  }
 0x8a1   : > { %4501 = vmatprep.subr.bf16.mxu0 %v4959_v6 }
 0x8a4   : > { %4502 = vmatpush3.bf16.msra.mxu0 %v4750_v14  ;;  %v4767_v14 = vld [vmem:[%s5143_s21 + $0xe0] sm:$0xff]  }
 0x8a5   : > { %4503 = vmatprep.subr.bf16.mxu0 %v4959_v6 }
 0x8a8   : > { %4504 = vmatpush3.bf16.msra.mxu0 %v4751_v15  ;;  %v4768_v15 = vld [vmem:[%s5143_s21 + $0xe8] sm:$0xff]  }
 0x8a9   : > { %4505 = vmatprep.subr.bf16.mxu0 %v4959_v6 }
 0x8ac   : > { %4506 = vmatpush3.bf16.msra.mxu0 %v4752_v16  ;;  %v4769_v16 = vld [vmem:[%s5143_s21 + $0xf0] sm:$0xff]  }
 0x8af   : > { %4508 = vmatmul.mubr.bf16.vlgmr.msra.gmra.mrb[28].mxu0 %v5235_v46 }
 0x922   : > { %v1831_v17 = vpop.f32.mrb[16].mxu0 }
 0x923   : > { %v5442_v19 = vadd.f32 %v5364_v18, %v1831_v17  ;;  %v4379_v21 = vpop.f32.mrb[17].mxu0  ;;  %v4770_v17 = vld [vmem:[%s5143_s21 + $0xf8] sm:$0xff]   ;;  %s5721_s21 = scalar_lea.vmem %s5662_s7, %s5116_s26 }
 0x924   : > { %v1834_v22 = vpop.f32.mrb[18].mxu0 }
 0x925   : > { %v5445_v23 = vadd.f32 %v5366_v20, %v1834_v22  ;;  %v4380_v24 = vpop.f32.mrb[19].mxu0 }
 0x942   : > { %v1993_v25 = vpop.f32.mrb[20].mxu0 }
 0x943   : > { %v4407_v26 = vpop.f32.mrb[21].mxu0  ;;  %4453 = vmatprep.mubr.msk.f32.mxu1 %vm1067_vm1, %v1993_v25 }
 0x944   : > { %v1996_v27 = vpop.f32.mrb[22].mxu0 }
 0x945   : > { %v4408_v28 = vpop.f32.mrb[23].mxu0  ;;  %4454 = vmatmul.mubr.msk.f32.vlgmr.msra.gmra.mrb[24].mxu1 %vm1067_vm1, %v1996_v27 }
 0x962   : > { %v2205_v29 = vpop.f32.mrb[24].mxu0 }
 0x963   : > { %v4447_v30 = vpop.f32.mrb[25].mxu0 }
 0x964   : > { %v2208_v31 = vpop.f32.mrb[26].mxu0 }
 0x965   : > { %v4579_v32 = vpack.c.bf16 %v2208_v31, %v2205_v29  ;;  %v4448_v18 = vpop.f32.mrb[27].mxu0 }
 0x967   : > { %4580 = vmatprep.subr.bf16.mxu1 %v4579_v32 }
 0x968   : > { %4582 = vmatpush3.bf16.msra.mxu1 %v4579_v32 }
 0x969   : > { %4463 = vmatprep.subr.bf16.mxu1 %v4959_v6 }
 0x982   : > { %v2673_v20 = vpop.f32.mrb[28].mxu0 }
 0x983   : > { %v4509_v33 = vpop.f32.mrb[29].mxu0 }
 0x984   : > { %v2676_v34 = vpop.f32.mrb[30].mxu0 }
 0x985   : > { %v4583_v35 = vpack.c.bf16 %v2676_v34, %v2673_v20  ;;  %v4510_v36 = vpop.f32.mrb[31].mxu0 }
 0x987   : > { %4585 = vmatprep.subr.msk.bf16.mxu0 %vm5278_vm2, %v4583_v35 }
 0x988   : > { %4588 = vmatpush3.bf16.xpose.msk.msra.mxu0 %vm5278_vm2, %v4583_v35 }
 0xa18   : > { %v4455_v37 = vpop.f32.mrb[24].mxu1 }
 0xa19   : > { %v2300_v38 = vmul.f32 0.17677669, %v4455_v37  ;;  %v2290_v39 = vpop.f32.mrb[25].mxu1 }
 0xa1a   : > { %v2299_v40 = vmul.f32 0.17677669, %v2290_v39 }
 0xa1b   : > { %v2304_v41 = vsel %vm1157_vm3, %v2300_v38, -inf }
 0xa1c   : > { %2305 = vmax.xlane.f32.xlu1 %v2304_v41  ;;  %v2301_v42 = vsel %vm1157_vm3, %v2299_v40, -inf }
 0xa1d   : > { %2302 = vmax.xlane.f32.xlu0 %v2301_v42 }
 0xaa9   : > { %v2306_v43 = vpop.xlane.xlu1 %2305 }
 0xaaa   : > { %v2308_v44 = vsub.f32 %v2300_v38, %v2306_v43  ;;  %v2303_v45 = vpop.xlane.xlu0 %2302 }
 0xaab   : > { %v2307_v47 = vsub.f32 %v2299_v40, %v2303_v45 }
 0xaac   : > { %v2311_v48 = vmul.f32 1.442695, %v2308_v44 }
 0xaad   : > { %v2309_v49 = vmul.f32 1.442695, %v2307_v47 }
 0xaae   : > { %4833 = vpow2.f32 %v2311_v48 }
 0xaaf   : > { %4835 = vpow2.f32 %v2309_v49 }
 0xab8   : > { %v4834_v4 = vpop.eup %4833 }
 0xab9   : > { %v4836_v50 = vpop.eup %4835  ;;  %v2316_v51 = vsel %vm1157_vm3, %v4834_v4, 0.0 }
 0xaba   : > { %2317 = vadd.xlane.f32.xlu1 %v2316_v51  ;;  %v2313_v52 = vsel %vm1157_vm3, %v4836_v50, 0.0 }
 0xabb   : > { %2314 = vadd.xlane.f32.xlu0 %v2313_v52 }
 0xb47   : > { %v2318_v53 = vpop.xlane.xlu1 %2317 }
 0xb48   : > { %4837 = vrcp.f32 %v2318_v53  ;;  %v2315_v54 = vpop.xlane.xlu0 %2314  ;;  %v4771_v53 = vld [vmem:[%s5149_s14 + $0x30] sm:$0xff]  }
 0xb49   : > { %4839 = vrcp.f32 %v2315_v54 }
 0xb52   : > { %v4838_v55 = vpop.eup %4837 }
 0xb53   : > { %v4840_v56 = vpop.eup %4839  ;;  %v2322_v59 = vmul.f32 %v4838_v55, %v4834_v4  ;;  %v4772_v55 = vld [vmem:[%s5149_s14 + $0x38] sm:$0xff]  }
 0xb54   : > { %v2321_v57 = vmul.f32 %v4840_v56, %v4836_v50 }
 0xb56   : > { %4460 = vmatprep.mubr.msk.f32.mxu1 %vm1157_vm3, %v2321_v57 }
 0xb57   : > { %4461 = vmatmul.mubr.msk.f32.vlgmr.msra.gmra.mrb[26].mxu1 %vm1157_vm3, %v2322_v59 }
 0xb58   : > { %4464 = vmatpush3.bf16.msra.mxu1 %v4753_v58  ;;  %4467 = vmatprep.mubr.msk.bf16.mxu1 %vm4960_vm0, %v4959_v6 }
 0xb59   : > { %4465 = vmatprep.subr.bf16.mxu1 %v4959_v6 }
 0xb5c   : > { %4466 = vmatpush3.bf16.msra.mxu1 %v4754_v60  ;;  %v4002_v60 = vld [vmem:[%s5721_s21] ss:$0 sm:$0xff]  ;;  %s4962_s21 = smov [#allocation3]  }
 0xb5d   : > { %4471 = vmatprep.subr.bf16.mxu1 %v4959_v6  ;;  %s4867_s14 = sshll.u32 %s4962_s21, 4  ;;  %s4868_s14 = int_to_ptr.vmem [resolvable:$false] %s4867_s14 }
 0xb5e   : > { %s4869_s28 = scalar_lea.vmem %s4868_s14, 512  ;;  %p4870_p5 = scmp.lt.s32.totalorder %s5596_s6, %s4868_s14 }
 0xb5f   : > { %p4871_p6 = scmp.lt.s32.totalorder %s4869_s28, %s4863_s24 }
 0xb61   : > { %p4872_p7 = por %p4871_p6, %p4870_p5 }
 0xb63   : > { %p4873_p8 = pnand %p4872_p7, %p4866_p4 }
 0xc2a   : > { %v4462_v61 = vpop.f32.mrb[26].mxu1 }
 0xc2b   : > { %v2395_v62 = vpop.f32.mrb[27].mxu1 }
 0xc2c   : > { %v2404_v0 = vpack.c.bf16 %v4462_v61, %v2395_v62 }
 0xc2e   : > { %4468 = vmatmul.mubr.msk.bf16.vlgmr.msra.gmra.mrb[28].mxu1 %vm1067_vm1, %v2404_v0 }
 0xc2f   : > { %4472 = vmatpush3.bf16.msra.mxu1 %v4755_v63  ;;  %4487 = vmatprep.mubr.msk.bf16.mxu1 %vm4960_vm0, %v4959_v6 }
 0xc30   : > { %4473 = vmatprep.subr.bf16.mxu1 %v4959_v6 }
 0xc33   : > { %4474 = vmatpush3.bf16.msra.mxu1 %v4756_v1 }
 0xc34   : > { %4475 = vmatprep.subr.bf16.mxu1 %v4959_v6 }
 0xc37   : > { %4476 = vmatpush3.bf16.msra.mxu1 %v4757_v2 }
 0xc38   : > { %4477 = vmatprep.subr.bf16.mxu1 %v4959_v6 }
 0xc3b   : > { %4478 = vmatpush3.bf16.msra.mxu1 %v4758_v3  ;;  %v4861_v3 = vld [vmem:[#allocation2] sm:$0xff] }
 0xc3c   : > { %4479 = vmatprep.subr.bf16.mxu1 %v4959_v6 }
 0xc3f   : > { %4480 = vmatpush3.bf16.msra.mxu1 %v4759_v5 }
 0xc40   : > { %4481 = vmatprep.subr.bf16.mxu1 %v4959_v6 }
 0xc43   : > { %4482 = vmatpush3.bf16.msra.mxu1 %v4760_v7  ;;  %v4862_v7 = vld [vmem:[#allocation2 + $0x8] sm:$0xff] }
 0xc44   : > { %4483 = vmatprep.subr.bf16.mxu1 %v4959_v6 }
 0xc47   : > { %4484 = vmatpush3.bf16.msra.mxu1 %v4761_v8 }
 0xc48   : > { %4485 = vmatprep.subr.bf16.mxu1 %v4959_v6 }
 0xc4b   : > { %4486 = vmatpush3.bf16.msra.mxu1 %v4762_v9  ;;  %v4773_v9 = vld [vmem:[%s5168_s29] ss:$8 sps:$4 sm:$0xff]  }
 0xc4c   : > { %4511 = vmatprep.subr.bf16.mxu1 %v4959_v6 }
 0xc4e   : > { %4488 = vmatmul.mubr.bf16.vlgmr.msra.gmra.mrb[32].mxu1 %v5235_v46 }
 0xc4f   : > { %4512 = vmatpush3.bf16.msra.mxu1 %v4763_v10  ;;  %4527 = vmatprep.mubr.msk.bf16.mxu1 %vm4960_vm0, %v4959_v6  ;;  %v4775_v10 = vld [vmem:[%s5168_s29 + $0x4] ss:$8 sps:$4 sm:$0xff]  }
 0xc50   : > { %4513 = vmatprep.subr.bf16.mxu1 %v4959_v6 }
 0xc53   : > { %4514 = vmatpush3.bf16.msra.mxu1 %v4764_v11  ;;  %v4778_v11 = vld [vmem:[%s5168_s29 + $0x14] ss:$8 sps:$4 sm:$0xff]  }
 0xc54   : > { %4515 = vmatprep.subr.bf16.mxu1 %v4959_v6 }
 0xc57   : > { %4516 = vmatpush3.bf16.msra.mxu1 %v4765_v12  ;;  %v4776_v12 = vld [vmem:[%s5168_s29 + $0x10] ss:$8 sps:$4 sm:$0xff]  }
 0xc58   : > { %4517 = vmatprep.subr.bf16.mxu1 %v4959_v6 }
 0xc5b   : > { %4518 = vmatpush3.bf16.msra.mxu1 %v4766_v13 }
 0xc5c   : > { %4519 = vmatprep.subr.bf16.mxu1 %v4959_v6 }
 0xc5f   : > { %4520 = vmatpush3.bf16.msra.mxu1 %v4767_v14 }
 0xc60   : > { %4521 = vmatprep.subr.bf16.mxu1 %v4959_v6 }
 0xc63   : > { %4522 = vmatpush3.bf16.msra.mxu1 %v4768_v15 }
 0xc64   : > { %4523 = vmatprep.subr.bf16.mxu1 %v4959_v6 }
 0xc67   : > { %4524 = vmatpush3.bf16.msra.mxu1 %v4769_v16 }
 0xc68   : > { %4525 = vmatprep.subr.bf16.mxu1 %v4959_v6 }
 0xc6b   : > { %4526 = vmatpush3.bf16.msra.mxu1 %v4770_v17 }
 0xc6e   : > { %4528 = vmatmul.mubr.bf16.vlgmr.msra.gmra.mrb[36].mxu1 %v5235_v46 }
 0xd01   : > { %v2459_v21 = vpop.f32.mrb[28].mxu1 }
 0xd02   : > { %v5505_v22 = vadd.f32 %v2459_v21, %v5442_v19  ;;  %v4469_v24 = vpop.f32.mrb[29].mxu1 }
 0xd03   : > { %v2462_v25 = vpop.f32.mrb[30].mxu1 }
 0xd04   : > { %v5508_v26 = vadd.f32 %v2462_v25, %v5445_v23  ;;  %v4470_v27 = vpop.f32.mrb[31].mxu1  ;;  %v4781_v25 = vld [vmem:[%s5168_s29 + $0x24] ss:$8 sps:$4 sm:$0xff]  }
 0xd05   : > { %v4784_v27 = vld [vmem:[%s5168_s29 + $0x34] ss:$8 sps:$4 sm:$0xff]  }
 0xd21   : > { %v2567_v28 = vpop.f32.mrb[32].mxu1 }
 0xd22   : > { %v4489_v29 = vpop.f32.mrb[33].mxu1  ;;  %4535 = vmatprep.mubr.msk.f32.mxu0 %vm1067_vm1, %v2567_v28  ;;  %v4782_v28 = vld [vmem:[%s5168_s29 + $0x30] ss:$8 sps:$4 sm:$0xff]  }
 0xd23   : > { %v2570_v30 = vpop.f32.mrb[34].mxu1  ;;  %v4787_v29 = vld [vmem:[%s5168_s29 + $0x44] ss:$8 sps:$4 sm:$0xff]  }
 0xd24   : > { %v4490_v31 = vpop.f32.mrb[35].mxu1  ;;  %4536 = vmatmul.mubr.msk.f32.vlgmr.msra.gmra.mrb[32].mxu0 %vm1067_vm1, %v2570_v30  ;;  %v4785_v30 = vld [vmem:[%s5168_s29 + $0x40] ss:$8 sps:$4 sm:$0xff]  }
 0xd25   : > { %v4790_v31 = vld [vmem:[%s5168_s29 + $0x54] ss:$8 sps:$4 sm:$0xff]  }
 0xd41   : > { %v2779_v32 = vpop.f32.mrb[36].mxu1 }
 0xd42   : > { %v4529_v46 = vpop.f32.mrb[37].mxu1 }
 0xd43   : > { %v2782_v18 = vpop.f32.mrb[38].mxu1  ;;  %v4793_v46 = vld [vmem:[%s5168_s29 + $0x64] ss:$8 sps:$4 sm:$0xff]  }
 0xd44   : > { %v4589_v20 = vpack.c.bf16 %v2782_v18, %v2779_v32  ;;  %v4530_v19 = vpop.f32.mrb[39].mxu1  ;;  %v4788_v32 = vld [vmem:[%s5168_s29 + $0x50] ss:$8 sps:$4 sm:$0xff]   ;;  %v4791_v18 = vld [vmem:[%s5168_s29 + $0x60] ss:$8 sps:$4 sm:$0xff]  }
 0xd45   : > { %v4794_v19 = vld [vmem:[%s5168_s29 + $0x70] ss:$8 sps:$4 sm:$0xff]  }
 0xd46   : > { %4590 = vmatprep.subr.bf16.mxu0 %v4589_v20 }
 0xd47   : > { %4592 = vmatpush3.bf16.msra.mxu0 %v4589_v20  ;;  %v4796_v20 = vld [vmem:[%s5168_s29 + $0x74] ss:$8 sps:$4 sm:$0xff]  }
 0xd48   : > { %4545 = vmatprep.subr.bf16.mxu0 %v4959_v6 }
 0xdf7   : > { %v4537_v23 = vpop.f32.mrb[32].mxu0 }
 0xdf8   : > { %v2874_v33 = vmul.f32 0.17677669, %v4537_v23  ;;  %v2864_v34 = vpop.f32.mrb[33].mxu0  ;;  %v4961_v23 = vmov 0  }
 0xdf9   : > { %v2873_v35 = vmul.f32 0.17677669, %v2864_v34 }
 0xdfa   : > { %v2878_v36 = vsel %vm1157_vm3, %v2874_v33, -inf }
 0xdfb   : > { %2879 = vmax.xlane.f32.xlu1 %v2878_v36  ;;  %v2875_v37 = vsel %vm1157_vm3, %v2873_v35, -inf }
 0xdfc   : > { %2876 = vmax.xlane.f32.xlu0 %v2875_v37 }
 0xe88   : > { %v2880_v38 = vpop.xlane.xlu1 %2879 }
 0xe89   : > { %v2882_v39 = vsub.f32 %v2874_v33, %v2880_v38  ;;  %v2877_v40 = vpop.xlane.xlu0 %2876 }
 0xe8a   : > { %v2881_v41 = vsub.f32 %v2873_v35, %v2877_v40 }
 0xe8b   : > { %v2885_v42 = vmul.f32 1.442695, %v2882_v39 }
 0xe8c   : > { %v2883_v43 = vmul.f32 1.442695, %v2881_v41 }
 0xe8d   : > { %4841 = vpow2.f32 %v2885_v42 }
 0xe8e   : > { %4843 = vpow2.f32 %v2883_v43 }
 0xe97   : > { %v4842_v44 = vpop.eup %4841 }
 0xe98   : > { %v4844_v45 = vpop.eup %4843  ;;  %v2890_v47 = vsel %vm1157_vm3, %v4842_v44, 0.0 }
 0xe99   : > { %2891 = vadd.xlane.f32.xlu1 %v2890_v47  ;;  %v2887_v48 = vsel %vm1157_vm3, %v4844_v45, 0.0 }
 0xe9a   : > { %2888 = vadd.xlane.f32.xlu0 %v2887_v48 }
 0xf26   : > { %v2892_v49 = vpop.xlane.xlu1 %2891 }
 0xf27   : > { %4845 = vrcp.f32 %v2892_v49  ;;  %v2889_v4 = vpop.xlane.xlu0 %2888 }
 0xf28   : > { %4847 = vrcp.f32 %v2889_v4 }
 0xf31   : > { %v4846_v50 = vpop.eup %4845 }
 0xf32   : > { %v4848_v51 = vpop.eup %4847  ;;  %v2896_v54 = vmul.f32 %v4846_v50, %v4842_v44  ;;  %v4797_v50 = vld [vmem:[%s5178_s0 + $0x40] sm:$0xff]  }
 0xf33   : > { %v2895_v52 = vmul.f32 %v4848_v51, %v4844_v45  ;;  %v4004_v45 = vld [vmem:[%s5723_s30] ss:$0 sm:$0xff]  ;;  %4203 = vmatprep.subr.bf16.mxu1 %v4797_v50 }
 0xf34   : > { %v4798_v51 = vld [vmem:[%s5178_s0] sm:$0xff]  }
 0xf35   : > { %4542 = vmatprep.mubr.msk.f32.mxu0 %vm1157_vm3, %v2895_v52  ;;  %4204 = vmatpush3.bf16.msra.mxu1 %v4798_v51  ;;  %v4799_v52 = vld [vmem:[%s5178_s0 + $0x48] sm:$0xff]  }
 0xf36   : > { %4543 = vmatmul.mubr.msk.f32.vlgmr.msra.gmra.mrb[34].mxu0 %vm1157_vm3, %v2896_v54  ;;  %4205 = vmatprep.subr.bf16.mxu1 %v4799_v52  ;;  %v4801_v54 = vld [vmem:[%s5178_s0 + $0x50] sm:$0xff]  }
 0xf37   : > { %4546 = vmatpush3.bf16.msra.mxu0 %v4771_v53  ;;  %4549 = vmatprep.mubr.msk.bf16.mxu0 %vm4960_vm0, %v4959_v6  ;;  %v4800_v53 = vld [vmem:[%s5178_s0 + $0x8] sm:$0xff]  }
 0xf38   : > { %4547 = vmatprep.subr.bf16.mxu0 %v4959_v6 }
 0xf39   : > { %4206 = vmatpush3.bf16.msra.mxu1 %v4800_v53 }
 0xf3a   : > { %4207 = vmatprep.subr.bf16.mxu1 %v4801_v54 }
 0xf3b   : > { %4548 = vmatpush3.bf16.msra.mxu0 %v4772_v55  ;;  %v4802_v55 = vld [vmem:[%s5178_s0 + $0x10] sm:$0xff]  }
 0xf3c   : > { %3202 = vmatprep.subr.bf16.mxu0 %v4775_v10 }
 0xf3d   : > { %4208 = vmatpush3.bf16.msra.mxu1 %v4802_v55 }
0x1009   : > { %v4544_v56 = vpop.f32.mrb[34].mxu0 }
0x100a   : > { %v2969_v57 = vpop.f32.mrb[35].mxu0 }
0x100b   : > { %v2978_v58 = vpack.c.bf16 %v4544_v56, %v2969_v57  ;;  %v4803_v56 = vld [vmem:[%s5178_s0 + $0x58] sm:$0xff]  }
0x100c   : > { %v4804_v57 = vld [vmem:[%s5178_s0 + $0x18] sm:$0xff]   ;;  %4209 = vmatprep.subr.bf16.mxu1 %v4803_v56 }
0x100d   : > { %4550 = vmatmul.mubr.msk.bf16.vlgmr.msra.gmra.mrb[36].mxu0 %vm1067_vm1, %v2978_v58  ;;  %4210 = vmatpush3.bf16.msra.mxu1 %v4804_v57  ;;  %v4805_v58 = vld [vmem:[%s5178_s0 + $0x60] sm:$0xff]  }
0x100e   : > { %3203 = vmatpush1.bf16.msra.mxu0 %v4773_v9  ;;  %3234 = vmatprep.mubr.bf16.mxu0 %v4961_v23 }
0x100f   : > { %3204 = vmatprep.subr.bf16.mxu0 %v4778_v11  ;;  %4211 = vmatprep.subr.bf16.mxu1 %v4805_v58  ;;  %v4021_v58 = vld [vmem:[%s698_s27] ss:$0 sm:$0xff] }
0x1012   : > { %3205 = vmatpush1.bf16.msra.mxu0 %v4776_v12 }
0x1013   : > { %3206 = vmatprep.subr.bf16.mxu0 %v4781_v25 }
0x10e0   : > { %v3033_v59 = vpop.f32.mrb[36].mxu0 }
0x10e1   : > { %v3040_v61 = vadd.f32 %v3033_v59, %v5505_v22  ;;  %v4551_v62 = vpop.f32.mrb[37].mxu0  ;;  %v4806_v59 = vld [vmem:[%s5178_s0 + $0x20] sm:$0xff]  }
0x10e2   : > { %v3036_v6 = vpop.f32.mrb[38].mxu0  ;;  %4212 = vmatpush3.bf16.msra.mxu1 %v4806_v59  ;;  %v4809_v62 = vld [vmem:[%s5178_s0 + $0x70] sm:$0xff]  }
0x10e3   : > { %v3049_v63 = vadd.f32 %v4002_v60, %v3040_v61  ;;  %v3041_v0 = vadd.f32 %v3036_v6, %v5508_v26  ;;  %v4552_v1 = vpop.f32.mrb[39].mxu0  ;;  %v4779_v26 = vld [vmem:[%s5168_s29 + $0x20] ss:$8 sps:$4 sm:$0xff]   ;;  %s5722_s29 = scalar_lea.vmem %s5663_s8, %s5116_s26  ;;  %v4810_v6 = vld [vmem:[%s5178_s0 + $0x30] sm:$0xff]   ;;  %s5730_s26 = sand.u32 1, %s5726_s18  }
0x10e4   : > { %3207 = vmatpush1.bf16.msra.mxu0 %v4779_v26  ;;  %v4003_v40 = vld [vmem:[%s5722_s29] ss:$0 sm:$0xff]  ;;  %v4808_v61 = vld [vmem:[%s5178_s0 + $0x28] sm:$0xff]   ;;  %v3112_v1 = vlaneseq  ;;  %s5603_s27 = scalar_lea.sflag [#allocation4], %s5730_s26 }
0x10e5   : > { %v3050_v2 = vadd.f32 %v4002_v60, %v3041_v0  ;;  %v5532_v5 = vadd.f32 %v4861_v3, %v3049_v63  ;;  %3208 = vmatprep.subr.bf16.mxu0 %v4784_v27  ;;  %v4807_v60 = vld [vmem:[%s5178_s0 + $0x68] sm:$0xff]   ;;  %v4811_v63 = vld [vmem:[%s5178_s0 + $0x78] sm:$0xff]  }
0x10e6   : > { %4213 = vmatprep.subr.bf16.mxu1 %v4807_v60  ;;  %v4812_v0 = vld [vmem:[%s5178_s0 + $0x38] sm:$0xff]  }
0x10e7   : > { %3055 = vadd.xlane.f32.xlu0 %v5532_v5  ;;  %v5535_v8 = vadd.f32 %v4862_v7, %v3050_v2  ;;  %4214 = vmatpush3.bf16.msra.mxu1 %v4808_v61  ;;  %v3113_v2 = vshrl.u32 %v3112_v1, 7  ;;  %v3110_v7 = vld [vmem:[%s5173_s15] sm:$0x3]  ;;  %s5724_s15 = sld [smem:[#allocation10_spill]] }
0x10e8   : > { %3209 = vmatpush1.bf16.msra.mxu0 %v4782_v28  ;;  %4215 = vmatprep.subr.bf16.mxu1 %v4809_v62 }
0x10e9   : > { %3057 = vadd.xlane.f32.xlu1 %v5535_v8  ;;  %3210 = vmatprep.subr.bf16.mxu0 %v4787_v29  ;;  %v3114_v3 = vsub.s32 0, %v3113_v2  ;;  %v3118_v9 = vsub.s32 1, %v3113_v2 }
0x10eb   : > { %4216 = vmatpush3.bf16.msra.mxu1 %v4810_v6  ;;  %v3115_v10 = vrot.slane %v3110_v7, %v3114_v3  ;;  %v3119_v11 = vrot.slane %v3110_v7, %v3118_v9 }
0x10ec   : > { %3211 = vmatpush1.bf16.msra.mxu0 %v4785_v30  ;;  %4217 = vmatprep.subr.bf16.mxu1 %v4811_v63 }
0x10ed   : > { %3212 = vmatprep.subr.bf16.mxu0 %v4790_v31  ;;  %s4050_s5 = sshll.u32 %s5724_s15, 8 }
0x10ee   : > { %s5594_s16 = scalar_lea.hbm %s5728_s17, %s4050_s5 }
0x10ef   : > { %4218 = vmatpush3.bf16.msra.mxu1 %v4812_v0 }
0x10f0   : > { %3213 = vmatpush1.bf16.msra.mxu0 %v4788_v32 }
0x10f1   : > { %3214 = vmatprep.subr.bf16.mxu0 %v4793_v46 }
0x10f4   : > { %3215 = vmatpush1.bf16.msra.mxu0 %v4791_v18 }
0x10f5   : > { %3216 = vmatprep.subr.bf16.mxu0 %v4796_v20 }
0x10f8   : > { %3217 = vmatpush1.bf16.msra.mxu0 %v4794_v19 }
0x1174   : > { %v3056_v13 = vpop.xlane.xlu0 %3055 }
0x1175   : > { %v3059_v14 = vmul.f32 0.0078125, %v3056_v13 }
0x1176   : > { %v3058_v15 = vpop.xlane.xlu1 %3057 }
0x1177   : > { %v3061_v16 = vsub.f32 %v5532_v5, %v3059_v14  ;;  %v3060_v17 = vmul.f32 0.0078125, %v3058_v15 }
0x1179   : > { %v3062_v21 = vsub.f32 %v5535_v8, %v3060_v17  ;;  %v3063_v22 = vmul.f32 %v3061_v16, %v3061_v16 }
0x117b   : > { %3065 = vadd.xlane.f32.xlu0 %v3063_v22  ;;  %v3064_v24 = vmul.f32 %v3062_v21, %v3062_v21 }
0x117d   : > { %3067 = vadd.xlane.f32.xlu1 %v3064_v24 }
0x1208   : > { %v3066_v33 = vpop.xlane.xlu0 %3065 }
0x1209   : > { %v3069_v34 = vmul.f32 0.0078125, %v3066_v33 }
0x120a   : > { %v3068_v35 = vpop.xlane.xlu1 %3067 }
0x120b   : > { %v3071_v36 = vadd.f32 1e-05, %v3069_v34  ;;  %v3070_v37 = vmul.f32 0.0078125, %v3068_v35 }
0x120d   : > { %4849 = vrsqrt.f32 %v3071_v36  ;;  %v3072_v38 = vadd.f32 1e-05, %v3070_v37 }
0x120f   : > { %4851 = vrsqrt.f32 %v3072_v38 }
0x1217   : > { %v4850_v39 = vpop.eup %4849 }
0x1218   : > { %v3075_v41 = vmul.f32 %v4850_v39, %v3061_v16 }
0x1219   : > { %v4852_v42 = vpop.eup %4851 }
0x121a   : > { %v3076_v43 = vmul.f32 %v4852_v42, %v3062_v21  ;;  %v3083_v44 = vmul.f32 %v4003_v40, %v3075_v41 }
0x121c   : > { %v3084_v47 = vmul.f32 %v4003_v40, %v3076_v43  ;;  %v3091_v48 = vadd.f32 %v4004_v45, %v3083_v44 }
0x121e   : > { %v3092_v49 = vadd.f32 %v4004_v45, %v3084_v47 }
0x1220   : > { %v3093_v4 = vpack.c.bf16 %v3092_v49, %v3091_v48 }
0x1222   : > { %3235 = vmatmul.mubr.bf16.vlgmr.msra.gmra.mrb[40].mxu0 %v3093_v4 }
0x12f5   : > { %v3236_v12 = vpop.f32.mrb[40].mxu0 }
0x12f6   : > { %v3237_v13 = vadd.f32 %v3236_v12, %v3115_v10  ;;  %v3238_v14 = vpop.f32.mrb[41].mxu0 }
0x12f7   : > { %v3239_v15 = vadd.f32 %v3238_v14, %v3119_v11  ;;  %v3240_v16 = vpop.f32.mrb[42].mxu0 }
0x12f8   : > { %v3249_v17 = vmul.f32 0.044715, %v3237_v13  ;;  %v3241_v21 = vadd.f32 %v3240_v16, %v3115_v10  ;;  %v3242_v22 = vpop.f32.mrb[43].mxu0  ;;  %v3245_v45 = vmul.f32 0.5, %v3237_v13 }
0x12f9   : > { %v3250_v24 = vmul.f32 0.044715, %v3239_v15  ;;  %v3243_v25 = vadd.f32 %v3242_v22, %v3119_v11  ;;  %v3246_v49 = vmul.f32 0.5, %v3239_v15 }
0x12fa   : > { %v3253_v26 = vmul.f32 %v3249_v17, %v3237_v13  ;;  %v3251_v27 = vmul.f32 0.044715, %v3241_v21  ;;  %v3247_v47 = vmul.f32 0.5, %v3241_v21 }
0x12fb   : > { %v3254_v28 = vmul.f32 %v3250_v24, %v3239_v15  ;;  %v3252_v29 = vmul.f32 0.044715, %v3243_v25  ;;  %v3248_v4 = vmul.f32 0.5, %v3243_v25 }
0x12fc   : > { %v3257_v30 = vmul.f32 %v3253_v26, %v3237_v13  ;;  %v3255_v31 = vmul.f32 %v3251_v27, %v3241_v21 }
0x12fd   : > { %v3258_v32 = vmul.f32 %v3254_v28, %v3239_v15  ;;  %v3256_v46 = vmul.f32 %v3252_v29, %v3243_v25 }
0x12fe   : > { %v3261_v18 = vadd.f32 %v3257_v30, %v3237_v13  ;;  %v3259_v20 = vmul.f32 %v3255_v31, %v3241_v21 }
0x12ff   : > { %v3260_v19 = vmul.f32 %v3256_v46, %v3243_v25  ;;  %v3262_v23 = vadd.f32 %v3258_v32, %v3239_v15 }
0x1300   : > { %v3265_v33 = vmul.f32 0.7978846, %v3261_v18  ;;  %v3263_v34 = vadd.f32 %v3259_v20, %v3241_v21 }
0x1301   : > { %v3264_v35 = vadd.f32 %v3260_v19, %v3243_v25  ;;  %v3266_v36 = vmul.f32 0.7978846, %v3262_v23 }
0x1302   : > { %4853 = vtanh.f32 %v3265_v33  ;;  %v3267_v37 = vmul.f32 0.7978846, %v3263_v34 }
0x1303   : > { %v3268_v38 = vmul.f32 0.7978846, %v3264_v35  ;;  %4855 = vtanh.f32 %v3266_v36 }
0x1304   : > { %4857 = vtanh.f32 %v3267_v37 }
0x1305   : > { %4859 = vtanh.f32 %v3268_v38 }
0x130c   : > { %v4854_v39 = vpop.eup %4853 }
0x130d   : > { %v4856_v40 = vpop.eup %4855  ;;  %v3273_v41 = vadd.f32 1.0, %v4854_v39 }
0x130e   : > { %v4858_v42 = vpop.eup %4857  ;;  %v3274_v43 = vadd.f32 1.0, %v4856_v40 }
0x130f   : > { %v4860_v44 = vpop.eup %4859  ;;  %v3275_v48 = vadd.f32 1.0, %v4858_v42  ;;  %v3277_v51 = vmul.f32 %v3273_v41, %v3245_v45 }
0x1310   : > { %v3276_v50 = vadd.f32 1.0, %v4860_v44  ;;  %v3278_v53 = vmul.f32 %v3274_v43, %v3246_v49 }
0x1311   : > { %v3279_v52 = vmul.f32 %v3275_v48, %v3247_v47 }
0x1312   : > { %v3280_v54 = vmul.f32 %v3276_v50, %v3248_v4 }
0x1313   : > { %v3281_v55 = vpack.c.bf16 %v3279_v52, %v3277_v51 }
0x1314   : > { %v3282_v56 = vpack.c.bf16 %v3280_v54, %v3278_v53 }
0x1316   : > { %3450 = vmatprep.mubr.bf16.mxu1 %v3282_v56 }
0x1317   : > { %3451 = vmatmul.mubr.bf16.vlgmr.msra.gmra.mrb[40].mxu1 %v3281_v55 }
0x13ea   : > { %v4219_v57 = vpop.f32.mrb[40].mxu1 }
0x13eb   : > { %v4220_v59 = vpop.f32.mrb[41].mxu1 }
0x13ec   : > { %v4221_v60 = vadd.f32 %v4220_v59, %v4219_v57  ;;  %v4222_v61 = vpop.f32.mrb[42].mxu1 }
0x13ed   : > { %v4223_v62 = vpop.f32.mrb[43].mxu1 }
0x13ee   : > { %v3453_v6 = vadd.f32 %v4221_v60, %v4021_v58  ;;  %v4224_v63 = vadd.f32 %v4223_v62, %v4222_v61 }
0x13f0   : > { %v3459_v0 = vadd.f32 %v3453_v6, %v5532_v5  ;;  %v3456_v1 = vadd.f32 %v4224_v63, %v4021_v58 }
0x13f2   : > { %3461 = vst [vmem:[#allocation2] sm:$0xff] %v3459_v0  ;;  %3463 = vst [vmem:[%s5184_s13] sm:$0xff] %v3459_v0  ;;  %v3460_v2 = vadd.f32 %v3456_v1, %v5535_v8 }
0x13f4   : > { %3462 = vst [vmem:[#allocation2 + $0x8] sm:$0xff] %v3460_v2  ;;  %3464 = vst [vmem:[%s5184_s13 + $0x8] sm:$0xff] %v3460_v2 }
0x13f5   : > { %4876 = shalt.err (!%p4873_p8)
}
0x13f6   : > { %s4877_s13 = scalar_lea.hbm %s5594_s16, 256  ;;  %s4881_s20 = scalar_lea.hbm %s5729_s25, 512 }
0x13f7   : > { %p4878_p10 = scmp.ne.s32.totalorder %s5594_s16, %s4877_s13  ;;  %p4882_p13 = scmp.lt.u32.totalorder %s5594_s16, %s5729_s25 }
0x13f8   : > { %p4883_p0 = scmp.lt.u32.totalorder %s4881_s20, %s4877_s13  ;;  %p4885_p2 = scmp.lt.u32.totalorder %s4877_s13, %s5594_s16 }
0x13f9   : > { %p4879_p11 = pnand %p4878_p10, %p5089_p3 }
0x13fa   : > { %p4884_p1 = por %p4883_p0, %p4882_p13 }
0x13fb   : > { %p4880_p12 = pneg %p4879_p11 }
0x13fc   : > { %p4886_p4 = por %p4885_p2, %p4884_p1 }
0x13fe   : > { %p4887_p5 = pnand %p4886_p4, %p4880_p12 }
0x1400   : > { %4890 = shalt.err (!%p4887_p5)
}
0x1401   : > { %s4963_s0 = smov 128   ;;  %s4964_s3 = smov 8  }
0x1402   : > { %4593 = dma.vmem_to_hbm [thread:$0]  (%p5089_p3), %s5596_s6, 256, %s5594_s16, %s5603_s27, %s4963_s0, %s4963_s0, %s4964_s3  }
0x1403 PF: > { %s5731_s4 = sld [smem:[#allocation13_spill]]  ;;  %s5732_s18 = sld [smem:[#allocation6_spill]] }
0x1409   : > { %p4599_p6 = scmp.ge.s32.totalorder %s5731_s4, 2  ;;  %s3494_s19 = sand.u32 1, %s5732_s18  }
0x140a   : > { %s3495_s23 = scalar_lea.sflag [#allocation4], %s3494_s19 }
0x140b   : > { %p4596_p7 = pnand %p4599_p6, %p5099_p9 }
0x140d   : > { %4924 = dma.done.wait (!%p4596_p7), %s3495_s23, 256  }
0x140e   : > { %4926 = vsyncadd (!%p4596_p7), %s3495_s23, 4294967040  ;;  %s27_s20 = sadd.s32 1, %s5731_s4   ;;  %s5734_s29 = sld [smem:[#allocation7_spill]] }
0x140f   : > { %p24_p8 = scmp.ge.s32.totalorder %s27_s20, 6   ;;  %s5735_s30 = sld [smem:[#allocation8_spill]] }
0x1410   : > { %s5736_s15 = sld [smem:[#allocation18_spill]]  ;;  %s5737_s16 = sld [smem:[#allocation11_spill]] }
0x1411   : > { %s5738_s17 = sld [smem:[#allocation12_spill]]  ;;  %s5739_s18 = sld [smem:[#allocation14_spill]] }
0x1412   : > { %s5740_s19 = sld [smem:[#allocation16_spill]]  ;;  %26 = sbr.rel (!%p24_p8) target bundleno = 14 (0xe), region = 166 }
0x1419   :  { %3500 = vsyncpa [#allocation4], 1 }
0x141a   :  { %3502 = vsyncpa [#allocation4 + $0x1], 1 }

</bundles_post_ra>
